<compile_context>
chip_gen: v5e
topology: v5e:2x2
jax: 0.10.0
libtpu: 0.0.40
codegen_flags: <defaults>
</compile_context>

<pallas_src>
import functools
import math

import jax
import jax.numpy as jnp
from jax import lax
from jax.experimental import pallas as pl
from jax.experimental.pallas import tpu as pltpu


# ------------------------------ in-kernel helpers ---------------------------

def _layernorm(x, gamma, beta, eps=1e-5):
    mu = jnp.mean(x, axis=-1, keepdims=True)
    var = jnp.mean(jnp.square(x - mu), axis=-1, keepdims=True)
    return (x - mu) * lax.rsqrt(var + eps) * gamma + beta


def _gelu_exact(x):
    # PyTorch nn.GELU default: 0.5 * x * (1 + erf(x / sqrt(2)))
    # TODO(synk): tanh-approx GELU would move work to the EUP on v6e/v7x if tolerance allows.
    return 0.5 * x * (1.0 + lax.erf(x * (1.0 / math.sqrt(2.0))))


# ------------------------------ kernels --------------------------------------

def attn_kernel(num_heads, scale,
                x_ref, g1_ref, b1_ref, wqkv_ref, wproj_ref, bproj_ref, o_ref):
    """One batch element: o = x + proj(MHSA(LN1(x)))."""
    x = x_ref[...].astype(jnp.float32)                       # (N, C)
    N, C = x.shape
    hd = C // num_heads

    xn = _layernorm(x, g1_ref[...], b1_ref[...])
    xn_b = xn.astype(jnp.bfloat16)

    # qkv^T = W_qkv^T @ xn^T : (3C, C) x (N, C) contracting C -> (3C, N).
    # Row order of wqkv_ref is (3, H, hd) (PyTorch qkv column order transposed),
    # so a free major-dim reshape yields the per-head batched view.
    qkvT = lax.dot_general(wqkv_ref[...], xn_b,
                           (((1,), (1,)), ((), ())),
                           preferred_element_type=jnp.float32)        # (3C, N) f32
    qkvT = qkvT.reshape(3 * num_heads, hd, N)                         # (3H, hd, N)
    q = qkvT[:num_heads].astype(jnp.bfloat16)                         # (H, hd, N)
    k = qkvT[num_heads:2 * num_heads].astype(jnp.bfloat16)            # (H, hd, N)
    v = qkvT[2 * num_heads:].astype(jnp.bfloat16)                     # (H, hd, N)

    # scores[h, n, m] = sum_d q[h, d, n] * k[h, d, m]   (one batched MXU contraction)
    s = lax.dot_general(q, k, (((1,), (1,)), ((0,), (0,))),
                        preferred_element_type=jnp.float32) * scale   # (H, N, N) f32
    s = s - jnp.max(s, axis=-1, keepdims=True)
    e = jnp.exp(s)
    p = e * pl.reciprocal(jnp.sum(e, axis=-1, keepdims=True), approx=True)

    # o[h, n, d] = sum_m p[h, n, m] * v[h, d, m]
    o = lax.dot_general(p.astype(jnp.bfloat16), v,
                        (((2,), (2,)), ((0,), (0,))),
                        preferred_element_type=jnp.float32)           # (H, N, hd) f32

    # Per-head output projection, then reduce over heads (avoids an (N, H*hd) relayout).
    xh = lax.dot_general(o.astype(jnp.bfloat16), wproj_ref[...],
                         (((2,), (1,)), ((0,), (0,))),
                         preferred_element_type=jnp.float32)          # (H, N, C) f32
    x1 = jnp.sum(xh, axis=0) + bproj_ref[...]
    o_ref[...] = (x + x1).astype(o_ref.dtype)


def mlp_kernel(x_ref, g2_ref, b2_ref, wfc1_ref, bfc1_ref, wfc2_ref, bfc2_ref, o_ref):
    """One (tm, C) token tile: o = x + fc2(gelu(fc1(LN2(x))))."""
    x = x_ref[...].astype(jnp.float32)                                # (tm, C)
    xn = _layernorm(x, g2_ref[...], b2_ref[...])
    h1 = lax.dot_general(xn.astype(jnp.bfloat16), wfc1_ref[...],
                         (((1,), (0,)), ((), ())),
                         preferred_element_type=jnp.float32) + bfc1_ref[...]
    h1 = _gelu_exact(h1)
    h2 = lax.dot_general(h1.astype(jnp.bfloat16), wfc2_ref[...],
                         (((1,), (0,)), ((), ())),
                         preferred_element_type=jnp.float32) + bfc2_ref[...]
    o_ref[...] = (x + h2).astype(o_ref.dtype)


# ------------------------------ wrapper ---------------------------------------

def _weight_spec(shape, single_buffer):
    idx = lambda *_g, _n=len(shape): (0,) * _n                 # constant block index
    if single_buffer:
        # Weights are grid-invariant: keep a single VMEM buffer (no double buffering).
        return pl.BlockSpec(shape, idx, pipeline_mode=pl.Buffered(1))
    return pl.BlockSpec(shape, idx)


def _vmem_limit(nbytes_estimate):
    # Estimated residency with 2x headroom, clamped to what all generations provide.
    return int(max(8 * 1024 * 1024, min(64 * 1024 * 1024, 2 * nbytes_estimate)))


def block_forward(x, params, num_heads, single_buffer_weights=True):
    B, N, C = x.shape
    assert C % num_heads == 0, "dim must be divisible by num_heads"
    hd = C // num_heads
    scale = hd ** -0.5
    hidden = params["w_fc1"].shape[1]
    f32b = 4
    bf16b = 2

    # ---- weight plumbing (runs once per call, outside the kernels) ----
    wqkv_t = params["w_qkv"].astype(jnp.bfloat16).T                           # (3C, C)
    wproj_h = params["w_proj"].astype(jnp.bfloat16).reshape(num_heads, hd, C)  # (H, hd, C)
    wfc1 = params["w_fc1"].astype(jnp.bfloat16)                                # (C, hidden)
    wfc2 = params["w_fc2"].astype(jnp.bfloat16)                                # (hidden, C)
    # lane-dense (1, D) bias / LN params
    g1 = params["g1"].reshape(1, C).astype(jnp.float32)
    b1 = params["b1"].reshape(1, C).astype(jnp.float32)
    g2 = params["g2"].reshape(1, C).astype(jnp.float32)
    b2 = params["b2"].reshape(1, C).astype(jnp.float32)
    bproj = params["b_proj"].reshape(1, C).astype(jnp.float32)
    bfc1 = params["b_fc1"].reshape(1, hidden).astype(jnp.float32)
    bfc2 = params["b_fc2"].reshape(1, C).astype(jnp.float32)

    wspec = functools.partial(_weight_spec, single_buffer=single_buffer_weights)
    wmult = 1 if single_buffer_weights else 2

    # -------------------- pass 1: y = x + Attention(LN1(x)) --------------------
    wbytes_attn = (3 * C * C + C * C) * bf16b + 3 * C * f32b
    inter_attn = (4 * N * C + 2 * (3 * C * N) + 3 * num_heads * N * N
                  + num_heads * N * hd + num_heads * N * C) * f32b
    io_attn = 2 * 2 * N * C * f32b          # in + out blocks, double-buffered
    attn_cost = pl.CostEstimate(
        flops=int(B * (8 * N * C * C + 4 * N * N * C)),
        transcendentals=int(B * num_heads * N * N),
        bytes_accessed=int(2 * B * N * C * f32b + wbytes_attn),
    )
    y = pl.pallas_call(
        functools.partial(attn_kernel, num_heads, scale),
        out_shape=jax.ShapeDtypeStruct((B, N, C), x.dtype),
        grid_spec=pltpu.PrefetchScalarGridSpec(
            num_scalar_prefetch=0,
            grid=(B,),
            in_specs=[
                pl.BlockSpec((None, N, C), lambda b: (b, 0, 0)),   # x: one batch slab
                wspec((1, C)), wspec((1, C)),                      # norm1 gamma, beta
                wspec((3 * C, C)),                                 # qkv weight (transposed)
                wspec((num_heads, hd, C)), wspec((1, C)),          # proj weight (per head), bias
            ],
            out_specs=pl.BlockSpec((None, N, C), lambda b: (b, 0, 0)),
        ),
        compiler_params=pltpu.CompilerParams(
            dimension_semantics=("parallel",),
            vmem_limit_bytes=_vmem_limit(wbytes_attn * wmult + inter_attn + io_attn)),
        cost_estimate=attn_cost,
    )(x, g1, b1, wqkv_t, wproj_h, bproj)

    # -------------------- pass 2: out = y + MLP(LN2(y)), token-tiled ------------
    tm = N
    for cand in (256, 128, 64, 32, 16, 8):
        if N % cand == 0:
            tm = cand
            break
    wbytes_mlp = 2 * C * hidden * bf16b + (3 * C + hidden) * f32b
    inter_mlp = (3 * tm * C + 3 * tm * hidden) * f32b
    io_mlp = 2 * 2 * tm * C * f32b
    mlp_cost = pl.CostEstimate(
        flops=int(4 * B * N * C * hidden),
        transcendentals=int(B * N * hidden),
        bytes_accessed=int(2 * B * N * C * f32b + wbytes_mlp),
    )
    out = pl.pallas_call(
        mlp_kernel,
        out_shape=jax.ShapeDtypeStruct((B, N, C), x.dtype),
        grid_spec=pltpu.PrefetchScalarGridSpec(
            num_scalar_prefetch=0,
            grid=(B, N // tm),
            in_specs=[
                pl.BlockSpec((None, tm, C), lambda b, t: (b, t, 0)),   # y token tile
                wspec((1, C)), wspec((1, C)),                          # norm2 gamma, beta
                wspec((C, hidden)), wspec((1, hidden)),                # fc1 weight, bias
                wspec((hidden, C)), wspec((1, C)),                     # fc2 weight, bias
            ],
            out_specs=pl.BlockSpec((None, tm, C), lambda b, t: (b, t, 0)),
        ),
        compiler_params=pltpu.CompilerParams(
            dimension_semantics=("parallel", "parallel"),
            vmem_limit_bytes=_vmem_limit(wbytes_mlp * wmult + inter_mlp + io_mlp)),
        cost_estimate=mlp_cost,
    )(y, g2, b2, wfc1, bfc1, wfc2, bfc2)
    return out


# ------------------------------ pure-JAX reference ---------------------------

def block_reference(x, params, num_heads):
    """Mirrors the PyTorch forward exactly (f32 math on the same weight values)."""
    B, N, C = x.shape
    hd = C // num_heads
    scale = hd ** -0.5
    w_qkv = params["w_qkv"].astype(jnp.float32)
    w_proj = params["w_proj"].astype(jnp.float32)
    w_fc1 = params["w_fc1"].astype(jnp.float32)
    w_fc2 = params["w_fc2"].astype(jnp.float32)

    def ln(t, g, b, eps=1e-5):
        mu = t.mean(-1, keepdims=True)
        var = ((t - mu) ** 2).mean(-1, keepdims=True)
        return (t - mu) / jnp.sqrt(var + eps) * g + b

    xn = ln(x, params["g1"], params["b1"])
    qkv = (xn @ w_qkv).reshape(B, N, 3, num_heads, hd).transpose(2, 0, 3, 1, 4)
    q, k, v = qkv[0], qkv[1], qkv[2]
    attn = jnp.einsum("bhnd,bhmd->bhnm", q, k) * scale
    attn = jax.nn.softmax(attn, axis=-1)
    o = jnp.einsum("bhnm,bhmd->bhnd", attn, v).transpose(0, 2, 1, 3).reshape(B, N, C)
    x = x + (o @ w_proj + params["b_proj"])
    xn2 = ln(x, params["g2"], params["b2"])
    h = jax.nn.gelu(xn2 @ w_fc1 + params["b_fc1"], approximate=False)
    return x + (h @ w_fc2 + params["b_fc2"])


# ------------------------------ test ------------------------------------------

if __name__ == "__main__":
    B, N, C, H = 2, 8, 128, 4          # batch, tokens, dim (lane-aligned), heads (hd=32)
    hidden = int(C * 4.0)

    key = jax.random.PRNGKey(0)
    ks = jax.random.split(key, 8)
    params = {
        "g1": jnp.ones((C,), jnp.float32),
        "b1": jnp.zeros((C,), jnp.float32),
        # MXU weights stored in bf16 (accumulation stays f32 inside the kernels)
        "w_qkv": (0.05 * jax.random.normal(ks[0], (C, 3 * C), jnp.float32)).astype(jnp.bfloat16),
        "w_proj": (0.05 * jax.random.normal(ks[1], (C, C), jnp.float32)).astype(jnp.bfloat16),
        "b_proj": 0.05 * jax.random.normal(ks[2], (C,), jnp.float32),
        "g2": jnp.ones((C,), jnp.float32),
        "b2": jnp.zeros((C,), jnp.float32),
        "w_fc1": (0.05 * jax.random.normal(ks[3], (C, hidden), jnp.float32)).astype(jnp.bfloat16),
        "b_fc1": 0.05 * jax.random.normal(ks[4], (hidden,), jnp.float32),
        "w_fc2": (0.05 * jax.random.normal(ks[5], (hidden, C), jnp.float32)).astype(jnp.bfloat16),
        "b_fc2": 0.05 * jax.random.normal(ks[6], (C,), jnp.float32),
    }
    x = jax.random.normal(ks[7], (B, N, C), jnp.float32)

    ref = block_reference(x, params, num_heads=H)

    def run_and_check(single_buffer_weights):
        out = block_forward(x, params, num_heads=H,
                            single_buffer_weights=single_buffer_weights)
        jax.block_until_ready(out)
        assert out.shape == (B, N, C)
        err = float(jnp.max(jnp.abs(out - ref)))
        assert err < 3e-2, f"Pallas output != reference (max abs err {err})"
        return out

    try:
        out = run_and_check(True)       # weights single-buffered (pl.Buffered(1))
    except Exception:
        out = run_and_check(False)      # fallback: default weight pipelining
    print("KERNEL_OK")
</pallas_src>

<mosaic_0001>
module attributes {stable_mosaic.version = 11 : i64} {
  func.func @attn_kernel(%arg0: i32, %arg1: memref<1x8x128xf32, #tpu.memory_space<vmem>>, %arg2: memref<1x128xf32, #tpu.memory_space<vmem>>, %arg3: memref<1x128xf32, #tpu.memory_space<vmem>>, %arg4: memref<384x128xbf16, #tpu.memory_space<vmem>>, %arg5: memref<4x32x128xbf16, #tpu.memory_space<vmem>>, %arg6: memref<1x128xf32, #tpu.memory_space<vmem>>, %arg7: memref<1x8x128xf32, #tpu.memory_space<vmem>>) attributes {dimension_semantics = [#tpu.dimension_semantics<parallel>], iteration_bounds = array<i64: 2>, scalar_prefetch = 0 : i64, scratch_operands = 0 : i64, tpu.core_type = #tpu.core_type<tc>, window_params = [{transform_indices = @transform_0, window_bounds = array<i64: 1, 8, 128>}, {pipeline_mode = #tpu.pipeline_mode<synchronous>, transform_indices = @transform_1, window_bounds = array<i64: 1, 128>}, {pipeline_mode = #tpu.pipeline_mode<synchronous>, transform_indices = @transform_2, window_bounds = array<i64: 1, 128>}, {pipeline_mode = #tpu.pipeline_mode<synchronous>, transform_indices = @transform_3, window_bounds = array<i64: 384, 128>}, {pipeline_mode = #tpu.pipeline_mode<synchronous>, transform_indices = @transform_4, window_bounds = array<i64: 4, 32, 128>}, {pipeline_mode = #tpu.pipeline_mode<synchronous>, transform_indices = @transform_5, window_bounds = array<i64: 1, 128>}, {transform_indices = @transform_6, window_bounds = array<i64: 1, 8, 128>}]} {
    %c0 = arith.constant 0 : index
    %c0_0 = arith.constant 0 : index
    %c0_1 = arith.constant 0 : index
    %0 = vector.load %arg1[%c0, %c0_0, %c0_1] : memref<1x8x128xf32, #tpu.memory_space<vmem>>, vector<1x8x128xf32>
    %1 = vector.shape_cast %0 : vector<1x8x128xf32> to vector<8x128xf32>
    %c0_2 = arith.constant 0 : index
    %c0_3 = arith.constant 0 : index
    %2 = vector.load %arg2[%c0_2, %c0_3] : memref<1x128xf32, #tpu.memory_space<vmem>>, vector<1x128xf32>
    %c0_4 = arith.constant 0 : index
    %c0_5 = arith.constant 0 : index
    %3 = vector.load %arg3[%c0_4, %c0_5] : memref<1x128xf32, #tpu.memory_space<vmem>>, vector<1x128xf32>
    %cst = arith.constant dense<0.000000e+00> : vector<8xf32>
    %4 = vector.multi_reduction <add>, %1, %cst [1] : vector<8x128xf32> to vector<8xf32>
    %5 = vector.shape_cast %4 : vector<8xf32> to vector<8x1xf32>
    %cst_6 = arith.constant 1.280000e+02 : f32
    %6 = vector.broadcast %cst_6 : f32 to vector<8x1xf32>
    %7 = arith.divf %5, %6 : vector<8x1xf32>
    %8 = vector.broadcast %7 : vector<8x1xf32> to vector<8x128xf32>
    %9 = arith.subf %1, %8 : vector<8x128xf32>
    %10 = arith.mulf %9, %9 : vector<8x128xf32>
    %cst_7 = arith.constant dense<0.000000e+00> : vector<8xf32>
    %11 = vector.multi_reduction <add>, %10, %cst_7 [1] : vector<8x128xf32> to vector<8xf32>
    %12 = vector.shape_cast %11 : vector<8xf32> to vector<8x1xf32>
    %cst_8 = arith.constant 1.280000e+02 : f32
    %13 = vector.broadcast %cst_8 : f32 to vector<8x1xf32>
    %14 = arith.divf %12, %13 : vector<8x1xf32>
    %15 = vector.broadcast %7 : vector<8x1xf32> to vector<8x128xf32>
    %16 = arith.subf %1, %15 : vector<8x128xf32>
    %cst_9 = arith.constant 9.99999974E-6 : f32
    %17 = vector.broadcast %cst_9 : f32 to vector<8x1xf32>
    %18 = arith.addf %14, %17 : vector<8x1xf32>
    %19 = math.rsqrt %18 : vector<8x1xf32>
    %20 = vector.broadcast %19 : vector<8x1xf32> to vector<8x128xf32>
    %21 = arith.mulf %16, %20 : vector<8x128xf32>
    %22 = vector.broadcast %2 : vector<1x128xf32> to vector<8x128xf32>
    %23 = arith.mulf %21, %22 : vector<8x128xf32>
    %24 = vector.broadcast %3 : vector<1x128xf32> to vector<8x128xf32>
    %25 = arith.addf %23, %24 : vector<8x128xf32>
    %26 = arith.truncf %25 : vector<8x128xf32> to vector<8x128xbf16>
    %c0_10 = arith.constant 0 : index
    %c0_11 = arith.constant 0 : index
    %27 = vector.load %arg4[%c0_10, %c0_11] : memref<384x128xbf16, #tpu.memory_space<vmem>>, vector<384x128xbf16>
    %cst_12 = arith.constant dense<0.000000e+00> : vector<384x8xf32>
    %28 = tpu.matmul %27, %26, %cst_12 {dimension_numbers = #tpu.dot_dimension_numbers<[1], [1], [0], [0], [0, 0, 1, 0], [], []>} : vector<384x128xbf16>, vector<8x128xbf16>, vector<384x8xf32> -> vector<384x8xf32>
    %29 = vector.shape_cast %28 : vector<384x8xf32> to vector<12x32x8xf32>
    %30 = vector.extract_strided_slice %29 {offsets = [0, 0, 0], sizes = [4, 32, 8], strides = [1, 1, 1]} : vector<12x32x8xf32> to vector<4x32x8xf32>
    %31 = arith.truncf %30 : vector<4x32x8xf32> to vector<4x32x8xbf16>
    %32 = vector.extract_strided_slice %29 {offsets = [4, 0, 0], sizes = [4, 32, 8], strides = [1, 1, 1]} : vector<12x32x8xf32> to vector<4x32x8xf32>
    %33 = arith.truncf %32 : vector<4x32x8xf32> to vector<4x32x8xbf16>
    %34 = vector.extract_strided_slice %29 {offsets = [8, 0, 0], sizes = [4, 32, 8], strides = [1, 1, 1]} : vector<12x32x8xf32> to vector<4x32x8xf32>
    %35 = arith.truncf %34 : vector<4x32x8xf32> to vector<4x32x8xbf16>
    %cst_13 = arith.constant dense<0.000000e+00> : vector<4x8x8xf32>
    %36 = tpu.matmul %31, %33, %cst_13 {dimension_numbers = #tpu.dot_dimension_numbers<[1], [1], [2], [2], [0, 0, 0, 2, 1, 2], [0], [0]>} : vector<4x32x8xbf16>, vector<4x32x8xbf16>, vector<4x8x8xf32> -> vector<4x8x8xf32>
    %cst_14 = arith.constant 0.176776692 : f32
    %37 = vector.broadcast %cst_14 : f32 to vector<4x8x8xf32>
    %38 = arith.mulf %36, %37 : vector<4x8x8xf32>
    %cst_15 = arith.constant dense<0xFF800000> : vector<4x8xf32>
    %39 = vector.multi_reduction <maximumf>, %38, %cst_15 [2] : vector<4x8x8xf32> to vector<4x8xf32>
    %40 = vector.shape_cast %39 : vector<4x8xf32> to vector<4x8x1xf32>
    %41 = vector.broadcast %40 : vector<4x8x1xf32> to vector<4x8x8xf32>
    %42 = arith.subf %38, %41 : vector<4x8x8xf32>
    %43 = math.exp %42 : vector<4x8x8xf32>
    %cst_16 = arith.constant dense<0.000000e+00> : vector<4x8xf32>
    %44 = vector.multi_reduction <add>, %43, %cst_16 [2] : vector<4x8x8xf32> to vector<4x8xf32>
    %45 = vector.shape_cast %44 : vector<4x8xf32> to vector<4x8x1xf32>
    %46 = tpu.reciprocal %45 {approx = true} : vector<4x8x1xf32> -> vector<4x8x1xf32>
    %47 = vector.broadcast %46 : vector<4x8x1xf32> to vector<4x8x8xf32>
    %48 = arith.mulf %43, %47 : vector<4x8x8xf32>
    %49 = arith.truncf %48 : vector<4x8x8xf32> to vector<4x8x8xbf16>
    %cst_17 = arith.constant dense<0.000000e+00> : vector<4x8x32xf32>
    %50 = tpu.matmul %49, %35, %cst_17 {dimension_numbers = #tpu.dot_dimension_numbers<[2], [2], [1], [1], [0, 0, 0, 1, 1, 1], [0], [0]>} : vector<4x8x8xbf16>, vector<4x32x8xbf16>, vector<4x8x32xf32> -> vector<4x8x32xf32>
    %51 = arith.truncf %50 : vector<4x8x32xf32> to vector<4x8x32xbf16>
    %c0_18 = arith.constant 0 : index
    %c0_19 = arith.constant 0 : index
    %c0_20 = arith.constant 0 : index
    %52 = vector.load %arg5[%c0_18, %c0_19, %c0_20] : memref<4x32x128xbf16, #tpu.memory_space<vmem>>, vector<4x32x128xbf16>
    %cst_21 = arith.constant dense<0.000000e+00> : vector<4x8x128xf32>
    %53 = tpu.matmul %51, %52, %cst_21 {dimension_numbers = #tpu.dot_dimension_numbers<[2], [1], [1], [2], [0, 0, 0, 1, 1, 2], [0], [0]>} : vector<4x8x32xbf16>, vector<4x32x128xbf16>, vector<4x8x128xf32> -> vector<4x8x128xf32>
    %cst_22 = arith.constant dense<0.000000e+00> : vector<8x128xf32>
    %54 = vector.multi_reduction <add>, %53, %cst_22 [0] : vector<4x8x128xf32> to vector<8x128xf32>
    %c0_23 = arith.constant 0 : index
    %c0_24 = arith.constant 0 : index
    %55 = vector.load %arg6[%c0_23, %c0_24] : memref<1x128xf32, #tpu.memory_space<vmem>>, vector<1x128xf32>
    %56 = vector.broadcast %55 : vector<1x128xf32> to vector<8x128xf32>
    %57 = arith.addf %54, %56 : vector<8x128xf32>
    %58 = arith.addf %1, %57 : vector<8x128xf32>
    %c0_25 = arith.constant 0 : index
    %c0_26 = arith.constant 0 : index
    %c0_27 = arith.constant 0 : index
    %59 = vector.load %arg7[%c0_25, %c0_26, %c0_27] : memref<1x8x128xf32, #tpu.memory_space<vmem>>, vector<1x8x128xf32>
    %60 = vector.shape_cast %59 : vector<1x8x128xf32> to vector<8x128xf32>
    %61 = vector.shape_cast %58 : vector<8x128xf32> to vector<1x8x128xf32>
    tpu.vector_store %arg7[%c0_25, %c0_26, %c0_27], %61 {strides = array<i32>} : memref<1x8x128xf32, #tpu.memory_space<vmem>>, vector<1x8x128xf32>,
    return
  }
  func.func @transform_0(%arg0: i32) -> (i32, i32, i32) {
    %c0_i32 = arith.constant 0 : i32
    %c0_i32_0 = arith.constant 0 : i32
    %c0_i32_1 = arith.constant 0 : i32
    return %arg0, %c0_i32, %c0_i32_0 : i32, i32, i32
  }
  func.func @transform_1(%arg0: i32) -> (i32, i32) {
    %c0_i32 = arith.constant 0 : i32
    %c0_i32_0 = arith.constant 0 : i32
    %c0_i32_1 = arith.constant 0 : i32
    return %c0_i32, %c0_i32_0 : i32, i32
  }
  func.func @transform_2(%arg0: i32) -> (i32, i32) {
    %c0_i32 = arith.constant 0 : i32
    %c0_i32_0 = arith.constant 0 : i32
    %c0_i32_1 = arith.constant 0 : i32
    return %c0_i32, %c0_i32_0 : i32, i32
  }
  func.func @transform_3(%arg0: i32) -> (i32, i32) {
    %c0_i32 = arith.constant 0 : i32
    %c0_i32_0 = arith.constant 0 : i32
    %c0_i32_1 = arith.constant 0 : i32
    return %c0_i32, %c0_i32_0 : i32, i32
  }
  func.func @transform_4(%arg0: i32) -> (i32, i32, i32) {
    %c0_i32 = arith.constant 0 : i32
    %c0_i32_0 = arith.constant 0 : i32
    %c0_i32_1 = arith.constant 0 : i32
    %c0_i32_2 = arith.constant 0 : i32
    return %c0_i32, %c0_i32_0, %c0_i32_1 : i32, i32, i32
  }
  func.func @transform_5(%arg0: i32) -> (i32, i32) {
    %c0_i32 = arith.constant 0 : i32
    %c0_i32_0 = arith.constant 0 : i32
    %c0_i32_1 = arith.constant 0 : i32
    return %c0_i32, %c0_i32_0 : i32, i32
  }
  func.func @transform_6(%arg0: i32) -> (i32, i32, i32) {
    %c0_i32 = arith.constant 0 : i32
    %c0_i32_0 = arith.constant 0 : i32
    %c0_i32_1 = arith.constant 0 : i32
    return %arg0, %c0_i32, %c0_i32_0 : i32, i32, i32
  }
}

module attributes {stable_mosaic.version = 11 : i64} {
  func.func @attn_kernel(%arg0: i32, %arg1: memref<1x8x128xf32, #tpu.memory_space<vmem>>, %arg2: memref<1x128xf32, #tpu.memory_space<vmem>>, %arg3: memref<1x128xf32, #tpu.memory_space<vmem>>, %arg4: memref<384x128xbf16, #tpu.memory_space<vmem>>, %arg5: memref<4x32x128xbf16, #tpu.memory_space<vmem>>, %arg6: memref<1x128xf32, #tpu.memory_space<vmem>>, %arg7: memref<1x8x128xf32, #tpu.memory_space<vmem>>) attributes {dimension_semantics = [#tpu.dimension_semantics<parallel>], iteration_bounds = array<i64: 2>, scalar_prefetch = 0 : i64, scratch_operands = 0 : i64, tpu.core_type = #tpu.core_type<tc>, window_params = [{transform_indices = @transform_0, window_bounds = array<i64: 1, 8, 128>}, {pipeline_mode = #tpu.pipeline_mode<synchronous>, transform_indices = @transform_1, window_bounds = array<i64: 1, 128>}, {pipeline_mode = #tpu.pipeline_mode<synchronous>, transform_indices = @transform_2, window_bounds = array<i64: 1, 128>}, {pipeline_mode = #tpu.pipeline_mode<synchronous>, transform_indices = @transform_3, window_bounds = array<i64: 384, 128>}, {pipeline_mode = #tpu.pipeline_mode<synchronous>, transform_indices = @transform_4, window_bounds = array<i64: 4, 32, 128>}, {pipeline_mode = #tpu.pipeline_mode<synchronous>, transform_indices = @transform_5, window_bounds = array<i64: 1, 128>}, {transform_indices = @transform_6, window_bounds = array<i64: 1, 8, 128>}]} {
    %c0 = arith.constant 0 : index
    %c0_0 = arith.constant 0 : index
    %c0_1 = arith.constant 0 : index
    %0 = vector.load %arg1[%c0, %c0_0, %c0_1] : memref<1x8x128xf32, #tpu.memory_space<vmem>>, vector<1x8x128xf32>
    %1 = vector.shape_cast %0 : vector<1x8x128xf32> to vector<8x128xf32>
    %c0_2 = arith.constant 0 : index
    %c0_3 = arith.constant 0 : index
    %2 = vector.load %arg2[%c0_2, %c0_3] : memref<1x128xf32, #tpu.memory_space<vmem>>, vector<1x128xf32>
    %c0_4 = arith.constant 0 : index
    %c0_5 = arith.constant 0 : index
    %3 = vector.load %arg3[%c0_4, %c0_5] : memref<1x128xf32, #tpu.memory_space<vmem>>, vector<1x128xf32>
    %cst = arith.constant dense<0.000000e+00> : vector<8xf32>
    %4 = vector.multi_reduction <add>, %1, %cst [1] : vector<8x128xf32> to vector<8xf32>
    %5 = vector.shape_cast %4 : vector<8xf32> to vector<8x1xf32>
    %cst_6 = arith.constant 1.280000e+02 : f32
    %6 = vector.broadcast %cst_6 : f32 to vector<8x1xf32>
    %7 = arith.divf %5, %6 : vector<8x1xf32>
    %8 = vector.broadcast %7 : vector<8x1xf32> to vector<8x128xf32>
    %9 = arith.subf %1, %8 : vector<8x128xf32>
    %10 = arith.mulf %9, %9 : vector<8x128xf32>
    %cst_7 = arith.constant dense<0.000000e+00> : vector<8xf32>
    %11 = vector.multi_reduction <add>, %10, %cst_7 [1] : vector<8x128xf32> to vector<8xf32>
    %12 = vector.shape_cast %11 : vector<8xf32> to vector<8x1xf32>
    %cst_8 = arith.constant 1.280000e+02 : f32
    %13 = vector.broadcast %cst_8 : f32 to vector<8x1xf32>
    %14 = arith.divf %12, %13 : vector<8x1xf32>
    %15 = vector.broadcast %7 : vector<8x1xf32> to vector<8x128xf32>
    %16 = arith.subf %1, %15 : vector<8x128xf32>
    %cst_9 = arith.constant 9.99999974E-6 : f32
    %17 = vector.broadcast %cst_9 : f32 to vector<8x1xf32>
    %18 = arith.addf %14, %17 : vector<8x1xf32>
    %19 = math.rsqrt %18 : vector<8x1xf32>
    %20 = vector.broadcast %19 : vector<8x1xf32> to vector<8x128xf32>
    %21 = arith.mulf %16, %20 : vector<8x128xf32>
    %22 = vector.broadcast %2 : vector<1x128xf32> to vector<8x128xf32>
    %23 = arith.mulf %21, %22 : vector<8x128xf32>
    %24 = vector.broadcast %3 : vector<1x128xf32> to vector<8x128xf32>
    %25 = arith.addf %23, %24 : vector<8x128xf32>
    %26 = arith.truncf %25 : vector<8x128xf32> to vector<8x128xbf16>
    %c0_10 = arith.constant 0 : index
    %c0_11 = arith.constant 0 : index
    %27 = vector.load %arg4[%c0_10, %c0_11] : memref<384x128xbf16, #tpu.memory_space<vmem>>, vector<384x128xbf16>
    %cst_12 = arith.constant dense<0.000000e+00> : vector<384x8xf32>
    %28 = tpu.matmul %27, %26, %cst_12 {dimension_numbers = #tpu.dot_dimension_numbers<[1], [1], [0], [0], [0, 0, 1, 0], [], []>} : vector<384x128xbf16>, vector<8x128xbf16>, vector<384x8xf32> -> vector<384x8xf32>
    %29 = vector.shape_cast %28 : vector<384x8xf32> to vector<12x32x8xf32>
    %30 = vector.extract_strided_slice %29 {offsets = [0, 0, 0], sizes = [4, 32, 8], strides = [1, 1, 1]} : vector<12x32x8xf32> to vector<4x32x8xf32>
    %31 = arith.truncf %30 : vector<4x32x8xf32> to vector<4x32x8xbf16>
    %32 = vector.extract_strided_slice %29 {offsets = [4, 0, 0], sizes = [4, 32, 8], strides = [1, 1, 1]} : vector<12x32x8xf32> to vector<4x32x8xf32>
    %33 = arith.truncf %32 : vector<4x32x8xf32> to vector<4x32x8xbf16>
    %34 = vector.extract_strided_slice %29 {offsets = [8, 0, 0], sizes = [4, 32, 8], strides = [1, 1, 1]} : vector<12x32x8xf32> to vector<4x32x8xf32>
    %35 = arith.truncf %34 : vector<4x32x8xf32> to vector<4x32x8xbf16>
    %cst_13 = arith.constant dense<0.000000e+00> : vector<4x8x8xf32>
    %36 = tpu.matmul %31, %33, %cst_13 {dimension_numbers = #tpu.dot_dimension_numbers<[1], [1], [2], [2], [0, 0, 0, 2, 1, 2], [0], [0]>} : vector<4x32x8xbf16>, vector<4x32x8xbf16>, vector<4x8x8xf32> -> vector<4x8x8xf32>
    %cst_14 = arith.constant 0.176776692 : f32
    %37 = vector.broadcast %cst_14 : f32 to vector<4x8x8xf32>
    %38 = arith.mulf %36, %37 : vector<4x8x8xf32>
    %cst_15 = arith.constant dense<0xFF800000> : vector<4x8xf32>
    %39 = vector.multi_reduction <maximumf>, %38, %cst_15 [2] : vector<4x8x8xf32> to vector<4x8xf32>
    %40 = vector.shape_cast %39 : vector<4x8xf32> to vector<4x8x1xf32>
    %41 = vector.broadcast %40 : vector<4x8x1xf32> to vector<4x8x8xf32>
    %42 = arith.subf %38, %41 : vector<4x8x8xf32>
    %43 = math.exp %42 : vector<4x8x8xf32>
    %cst_16 = arith.constant dense<0.000000e+00> : vector<4x8xf32>
    %44 = vector.multi_reduction <add>, %43, %cst_16 [2] : vector<4x8x8xf32> to vector<4x8xf32>
    %45 = vector.shape_cast %44 : vector<4x8xf32> to vector<4x8x1xf32>
    %46 = tpu.reciprocal %45 {approx = true} : vector<4x8x1xf32> -> vector<4x8x1xf32>
    %47 = vector.broadcast %46 : vector<4x8x1xf32> to vector<4x8x8xf32>
    %48 = arith.mulf %43, %47 : vector<4x8x8xf32>
    %49 = arith.truncf %48 : vector<4x8x8xf32> to vector<4x8x8xbf16>
    %cst_17 = arith.constant dense<0.000000e+00> : vector<4x8x32xf32>
    %50 = tpu.matmul %49, %35, %cst_17 {dimension_numbers = #tpu.dot_dimension_numbers<[2], [2], [1], [1], [0, 0, 0, 1, 1, 1], [0], [0]>} : vector<4x8x8xbf16>, vector<4x32x8xbf16>, vector<4x8x32xf32> -> vector<4x8x32xf32>
    %51 = arith.truncf %50 : vector<4x8x32xf32> to vector<4x8x32xbf16>
    %c0_18 = arith.constant 0 : index
    %c0_19 = arith.constant 0 : index
    %c0_20 = arith.constant 0 : index
    %52 = vector.load %arg5[%c0_18, %c0_19, %c0_20] : memref<4x32x128xbf16, #tpu.memory_space<vmem>>, vector<4x32x128xbf16>
    %cst_21 = arith.constant dense<0.000000e+00> : vector<4x8x128xf32>
    %53 = tpu.matmul %51, %52, %cst_21 {dimension_numbers = #tpu.dot_dimension_numbers<[2], [1], [1], [2], [0, 0, 0, 1, 1, 2], [0], [0]>} : vector<4x8x32xbf16>, vector<4x32x128xbf16>, vector<4x8x128xf32> -> vector<4x8x128xf32>
    %cst_22 = arith.constant dense<0.000000e+00> : vector<8x128xf32>
    %54 = vector.multi_reduction <add>, %53, %cst_22 [0] : vector<4x8x128xf32> to vector<8x128xf32>
    %c0_23 = arith.constant 0 : index
    %c0_24 = arith.constant 0 : index
    %55 = vector.load %arg6[%c0_23, %c0_24] : memref<1x128xf32, #tpu.memory_space<vmem>>, vector<1x128xf32>
    %56 = vector.broadcast %55 : vector<1x128xf32> to vector<8x128xf32>
    %57 = arith.addf %54, %56 : vector<8x128xf32>
    %58 = arith.addf %1, %57 : vector<8x128xf32>
    %c0_25 = arith.constant 0 : index
    %c0_26 = arith.constant 0 : index
    %c0_27 = arith.constant 0 : index
    %59 = vector.load %arg7[%c0_25, %c0_26, %c0_27] : memref<1x8x128xf32, #tpu.memory_space<vmem>>, vector<1x8x128xf32>
    %60 = vector.shape_cast %59 : vector<1x8x128xf32> to vector<8x128xf32>
    %61 = vector.shape_cast %58 : vector<8x128xf32> to vector<1x8x128xf32>
    tpu.vector_store %arg7[%c0_25, %c0_26, %c0_27], %61 {strides = array<i32>} : memref<1x8x128xf32, #tpu.memory_space<vmem>>, vector<1x8x128xf32>,
    return
  }
  func.func @transform_0(%arg0: i32) -> (i32, i32, i32) {
    %c0_i32 = arith.constant 0 : i32
    %c0_i32_0 = arith.constant 0 : i32
    %c0_i32_1 = arith.constant 0 : i32
    return %arg0, %c0_i32, %c0_i32_0 : i32, i32, i32
  }
  func.func @transform_1(%arg0: i32) -> (i32, i32) {
    %c0_i32 = arith.constant 0 : i32
    %c0_i32_0 = arith.constant 0 : i32
    %c0_i32_1 = arith.constant 0 : i32
    return %c0_i32, %c0_i32_0 : i32, i32
  }
  func.func @transform_2(%arg0: i32) -> (i32, i32) {
    %c0_i32 = arith.constant 0 : i32
    %c0_i32_0 = arith.constant 0 : i32
    %c0_i32_1 = arith.constant 0 : i32
    return %c0_i32, %c0_i32_0 : i32, i32
  }
  func.func @transform_3(%arg0: i32) -> (i32, i32) {
    %c0_i32 = arith.constant 0 : i32
    %c0_i32_0 = arith.constant 0 : i32
    %c0_i32_1 = arith.constant 0 : i32
    return %c0_i32, %c0_i32_0 : i32, i32
  }
  func.func @transform_4(%arg0: i32) -> (i32, i32, i32) {
    %c0_i32 = arith.constant 0 : i32
    %c0_i32_0 = arith.constant 0 : i32
    %c0_i32_1 = arith.constant 0 : i32
    %c0_i32_2 = arith.constant 0 : i32
    return %c0_i32, %c0_i32_0, %c0_i32_1 : i32, i32, i32
  }
  func.func @transform_5(%arg0: i32) -> (i32, i32) {
    %c0_i32 = arith.constant 0 : i32
    %c0_i32_0 = arith.constant 0 : i32
    %c0_i32_1 = arith.constant 0 : i32
    return %c0_i32, %c0_i32_0 : i32, i32
  }
  func.func @transform_6(%arg0: i32) -> (i32, i32, i32) {
    %c0_i32 = arith.constant 0 : i32
    %c0_i32_0 = arith.constant 0 : i32
    %c0_i32_1 = arith.constant 0 : i32
    return %arg0, %c0_i32, %c0_i32_0 : i32, i32, i32
  }
}

</mosaic_0001>

<bundles_post_ra>
// kernel: tpu_custom_call.1
= control target key start
LH: loop header
LB: loop body
LE: loop exit
PB: predicated region body
PF: predicated region fallthrough
CT: control target
= control target key end

     0   :  { %11 = vsyncpa [#allocation3], 0  ;;  %s2132_s0 = inlined_call_operand.hbm [shape: f32[2,8,128], index: 0, kind: input, shape index: {}]   ;;  %s2133_s1 = inlined_call_operand.hbm [shape: f32[1,128], index: 1, kind: input, shape index: {}]   ;;  %s2134_s2 = inlined_call_operand.vmem [shape: f32[1,128], index: 2, kind: input, shape index: {}]   ;;  %s2135_s3 = inlined_call_operand.hbm [shape: bf16[384,128], index: 3, kind: input, shape index: {}]   ;;  %s2136_s4 = inlined_call_operand.hbm [shape: bf16[4,32,128], index: 4, kind: input, shape index: {}]   ;;  %s2137_s5 = inlined_call_operand.vmem [shape: f32[1,128], index: 5, kind: input, shape index: {}]   ;;  %s2138_s6 = inlined_call_operand.hbm [shape: f32[2,8,128], index: 6, kind: output, shape index: {}]  }
   0x1   :  { %13 = vsyncpa [#allocation3 + $0x1], 0 }
   0x2   :  { %14 = vsyncpa [#allocation6], 0 }
   0x3   :  { %15 = vsyncpa [#allocation9], 0 }
   0x4   :  { %16 = vsyncpa [#allocation4], 0 }
   0x5   :  { %18 = vsyncpa [#allocation4 + $0x1], 0  ;;  %s1931_s21 = smov 0   ;;  %s1933_s22 = smov 0  }
   0x6   :  { %s1935_s23 = smov 0   ;;  %s1937_s24 = smov 0  }
   0x7 LB: > { %s1952_s25 = sadd.s32 4294967295, %s1888_s24   ;;  %s1389_s26 = sadd.s32 4294967294, %s1888_s24   ;;  %s1888_s24 = sphi %s1937_s24, %s2149_s24   ;;  %s1884_s23 = sphi %s1935_s23, %s2148_s23   ;;  %s1880_s22 = sphi %s1933_s22, %s2147_s22   ;;  %s1876_s21 = sphi %s1931_s21, %s2146_s21  }
   0x8   : > { %p44_p0 = scmp.ne.s32.totalorder %s1880_s22, %s1876_s21  ;;  %p45_p1 = scmp.eq.s32.totalorder %s1952_s25, 0 }
   0x9   : > { %p173_p2 = scmp.eq.s32.totalorder %s1952_s25, 1  ;;  %p179_p3 = scmp.eq.s32.totalorder %s1389_s26, 1 }
   0xa   : > { %p1961_p4 = por %p45_p1, %p44_p0  ;;  %p1390_p5 = scmp.ge.s32.totalorder %s1888_s24, 1 }
   0xb   : > { %p1966_p6 = por %p179_p3, %p44_p0  ;;  %p186_p7 = scmp.lt.s32.totalorder %s1888_s24, 3 }
   0xc   : > { %s198_s7 = sshll.u32 %s2133_s1, 4  ;;  %s1890_s9 = smov [#allocation5]   ;;  %s199_s7 = int_to_ptr.hbm [resolvable:$true] %s198_s7 }
   0xd   : > { %p1974_p8 = pnand %p1390_p5, %p186_p7  ;;  %s200_s10 = sshll.u32 %s1890_s9, 4  ;;  %s201_s10 = int_to_ptr.vmem [resolvable:$true] %s200_s10 }
   0xe   : > { %s212_s13 = sshll.u32 %s2135_s3, 4  ;;  %s1891_s15 = smov [#allocation7]   ;;  %s213_s13 = int_to_ptr.hbm [resolvable:$true] %s212_s13 }
   0xf   : > { %p1598_p10 = pneg %p1974_p8  ;;  %s214_s16 = sshll.u32 %s1891_s15, 4  ;;  %s215_s16 = int_to_ptr.vmem [resolvable:$true] %s214_s16 }
  0x10   : > { %s1892_s17 = smov 64   ;;  %s1893_s18 = smov 4  }
  0x11   : > { %p1986_p11 = pnand %p1598_p10, %p45_p1  ;;  %s226_s26 = sshll.u32 %s2136_s4, 4  ;;  %s227_s26 = int_to_ptr.hbm [resolvable:$true] %s226_s26 }
  0x12   : > { %s1894_s29 = smov [#allocation8]   ;;  %p38_p13 = scmp.ne.s32.totalorder %s1884_s23, %s1880_s22 }
  0x13   : > { %1601 = dma.hbm_to_vmem [thread:$0]  (!%p1986_p11), %s199_s7, 16, %s201_s10, [#allocation6]  }
  0x14   : > { %1604 = dma.hbm_to_vmem [thread:$0]  (!%p1986_p11), %s213_s13, 3072, %s215_s16, [#allocation6], %s1892_s17, %s1892_s17, %s1893_s18  }
  0x15   : > { %s228_s30 = sshll.u32 %s1894_s29, 4  ;;  %s2000_s7 = sadd.s32 1, %s1888_s24   ;;  %s229_s30 = int_to_ptr.vmem [resolvable:$true] %s228_s30 }
  0x16   : > { %1607 = dma.hbm_to_vmem [thread:$0]  (!%p1986_p11), %s227_s26, 1024, %s229_s30, [#allocation9], %s1892_s17, %s1892_s17, %s1893_s18  }
  0x17   : > { %s28_s9 = ssub.s32 %s1888_s24, %s2000_s7  ;;  %s31_s10 = sadd.s32 1, %s1884_s23 }
  0x18   : > { %p29_p12 = scmp.eq.s32.totalorder %s28_s9, 0  ;;  %p39_p0 = scmp.eq.s32.totalorder %s1888_s24, 0 }
  0x19   : > { %p2013_p3 = por %p173_p2, %p38_p13  ;;  %p1619_p5 = scmp.lt.s32.totalorder %s1888_s24, 2 }
  0x1a   : > { %s2009_s11 = scalar_select %p29_p12, %s1884_s23, %s31_s10  }
  0x1b   : > { %s245_s13 = sand.u32 1, %s1884_s23   ;;  %s1396_s15 = sshll.u32 %s1888_s24, 3 }
  0x1c   : > { %p40_p7 = por %p39_p0, %p38_p13  ;;  %s1395_s14 = sshll.u32 %s245_s13, 3 }
  0x1d   : > { %s253_s18 = scalar_lea.hbm %s2132_s0, %s1396_s15  ;;  %s249_s20 = scalar_lea.vmem [#allocation2], %s1395_s14 }
  0x1e   : > { %s255_s19 = sshll.u32 %s253_s18, 4  ;;  %s257_s26 = sshll.u32 %s249_s20, 4  ;;  %s256_s19 = int_to_ptr.hbm [resolvable:$true] %s255_s19  ;;  %s258_s26 = int_to_ptr.vmem [resolvable:$true] %s257_s26 }
  0x1f   : > { %p2023_p10 = pnand %p1619_p5, %p40_p7  ;;  %s246_s30 = scalar_lea.sflag [#allocation3], %s245_s13 }
  0x20   : > { %s1784_s9 = sshra.s32 %s256_s19, 4  ;;  %s1791_s14 = scalar_lea.hbm %s2132_s0, 16  ;;  %s1785_s9 = int_to_ptr.hbm [resolvable:$true] %s1784_s9 }
  0x21   : > { %s1786_s10 = scalar_lea.hbm %s1785_s9, 8  ;;  %p1788_p11 = pneg %p2023_p10 }
  0x22   : > { %p1787_p2 = scmp.ne.s32.totalorder %s1785_s9, %s1786_s10  ;;  %p1792_p0 = scmp.lt.s32.totalorder %s1785_s9, %s2132_s0 }
  0x23   : > { %p1793_p5 = scmp.lt.s32.totalorder %s1791_s14, %s1786_s10 }
  0x24   : > { %p1789_p12 = pnand %p1788_p11, %p1787_p2 }
  0x25   : > { %p1794_p7 = por %p1793_p5, %p1792_p0 }
  0x26   : > { %p1790_p13 = pneg %p1789_p12 }
  0x28   : > { %p1795_p9 = pnand %p1794_p7, %p1790_p13 }
  0x2a   : > { %1798 = shalt.err (!%p1795_p9)
}
  0x2b   : > { %1611 = dma.hbm_to_vmem [thread:$0]  (!%p2023_p10), %s256_s19, 128, %s258_s26, %s246_s30  }
  0x2c   : > { %266 = sbr.rel (%p1974_p8) target bundleno = 1399 (0x577), region = 44  ;;  %s2040_s13 = sand.u32 (!%p1974_p8), 1, %s1880_s22  }
  0x2d   : > { %s1398_s20 = sshll.u32 (!%p1974_p8), %s2040_s13, 3  ;;  %s269_s15 = scalar_lea.sflag (!%p1974_p8), [#allocation3], %s2040_s13 }
  0x2e   : > { %s272_s9 = scalar_lea.vmem (!%p1974_p8), [#allocation2], %s1398_s20 }
  0x31   : > { %1859 = dma.done.wait (%p1961_p4), %s269_s15, 128  }
  0x32   : > { %1861 = vsyncadd (%p1961_p4), %s269_s15, 4294967168 }
  0x33   : > { %1863 = dma.done.wait (%p45_p1), [#allocation6], 3088  }
  0x34   : > { %1865 = vsyncadd (%p45_p1), [#allocation6], 4294964208 }
  0x35   : > { %1867 = dma.done.wait (%p45_p1), [#allocation9], 1024  }
  0x36   : > { %1869 = vsyncadd (%p45_p1), [#allocation9], 4294966272  ;;  %v2058_v0 = vld [vmem:[%s272_s9] sm:$0xff]  ;;  %v1895_v1 = vmov 128.0   ;;  %v1671_v21 = vld [vmem:[#allocation5] ss:$0 sm:$0xff] }
  0x37   : > { %321 = vadd.xlane.f32.xlu0 %v2058_v0  ;;  %1674 = vrcp.f32 %v1895_v1  ;;  %v1672_v24 = vld [vmem:[%s2134_s2] ss:$0 sm:$0xff]  ;;  %v1547_v28 = vld [vmem:[#allocation7] sm:$0xff]  ;;  %v1549_v30 = vld [vmem:[#allocation7 + $0x10] sm:$0xff]  ;;  %vm766_vm4 = vcmask 261120   ;;  %vm955_vm5 = vcmask 64512  }
  0x38   : > { %v1548_v29 = vld [vmem:[#allocation7 + $0x8] sm:$0xff]  ;;  %v1550_v31 = vld [vmem:[#allocation7 + $0x18] sm:$0xff]  ;;  %v1551_v32 = vld [vmem:[#allocation7 + $0x20] sm:$0xff]  ;;  %s1544_s19 = sshll.u32 %s1952_s25, 3  ;;  %s316_s14 = scalar_lea.vmem [#allocation10], %s1398_s20 }
  0x39   : > { %v1556_v33 = vld [vmem:[#allocation7 + $0x48] sm:$0xff]  ;;  %v1557_v35 = vld [vmem:[#allocation7 + $0x50] sm:$0xff]  ;;  %v1558_v37 = vld [vmem:[#allocation7 + $0x58] sm:$0xff]  ;;  %s1285_s16 = scalar_lea.hbm %s2138_s6, %s1544_s19  ;;  %s1287_s17 = sshll.u32 %s316_s14, 4  ;;  %s1288_s17 = int_to_ptr.vmem [resolvable:$true] %s1287_s17 }
  0x3a   : > { %v1552_v34 = vld [vmem:[#allocation7 + $0x28] sm:$0xff]  ;;  %v1553_v36 = vld [vmem:[#allocation7 + $0x30] sm:$0xff]  ;;  %v1554_v38 = vld [vmem:[#allocation7 + $0x38] sm:$0xff]  ;;  %s1289_s18 = sshll.u32 %s1285_s16, 4  ;;  %s1275_s25 = scalar_lea.sflag [#allocation4], %s2040_s13  ;;  %s1290_s18 = int_to_ptr.hbm [resolvable:$true] %s1289_s18 }
  0x3b   : > { %v1559_v39 = vld [vmem:[#allocation7 + $0x60] sm:$0xff]  ;;  %v1560_v41 = vld [vmem:[#allocation7 + $0x68] sm:$0xff]  ;;  %v1561_v55 = vld [vmem:[#allocation7 + $0x70] sm:$0xff]  ;;  %s1828_s15 = sshra.s32 %s1290_s18, 4  ;;  %s1834_s8 = scalar_lea.hbm %s2138_s6, 16  ;;  %s1829_s15 = int_to_ptr.hbm [resolvable:$true] %s1828_s15 }
  0x3c   : > { %v1555_v56 = vld [vmem:[#allocation7 + $0x40] sm:$0xff]  ;;  %s1830_s9 = scalar_lea.hbm %s1829_s15, 8  ;;  %p1835_p9 = scmp.lt.s32.totalorder %s1829_s15, %s2138_s6 }
  0x3d   : > { %v1675_v2 = vpop.eup %1674  ;;  %p1831_p1 = scmp.ne.s32.totalorder %s1829_s15, %s1830_s9  ;;  %p1836_p10 = scmp.lt.s32.totalorder %s1834_s8, %s1830_s9 }
  0x3e   : > { %v324_v3 = vmul.f32 128.0, %v1675_v2  ;;  %vm328_vm0 = vweird.f32 %v1675_v2 }
  0x3f   : > { %p1832_p4 = pnand %p1831_p1, %p2013_p3  ;;  %p1837_p2 = por %p1836_p10, %p1835_p9 }
  0x40   : > { %v325_v4 = vsub.f32 1.0, %v324_v3 }
  0x41   : > { %p1833_p8 = pneg %p1832_p4 }
  0x42   : > { %v326_v5 = vmul.f32 %v1675_v2, %v325_v4 }
  0x43   : > { %p1838_p11 = pnand %p1837_p2, %p1833_p8 }
  0x44   : > { %v327_v6 = vadd.f32 %v1675_v2, %v326_v5 }
  0x46   : > { %v329_v7 = vsel %vm328_vm0, %v1675_v2, %v327_v6 }
  0xaa   : > { %v322_v8 = vpop.xlane.xlu0 %321 }
  0xab   : > { %v330_v9 = vmul.f32 %v329_v7, %v322_v8  ;;  %v1562_v8 = vld [vmem:[#allocation7 + $0x78] sm:$0xff] }
  0xad   : > { %v331_v10 = vsub.f32 %v2058_v0, %v330_v9 }
  0xaf   : > { %v332_v11 = vmul.f32 %v331_v10, %v331_v10 }
  0xb1   : > { %333 = vadd.xlane.f32.xlu0 %v332_v11 }
 0x124   : > { %v334_v12 = vpop.xlane.xlu0 %333 }
 0x125   : > { %v335_v13 = vmul.f32 %v334_v12, %v329_v7 }
 0x127   : > { %v336_v14 = vadd.f32 1e-05, %v335_v13 }
 0x129   : > { %1676 = vrsqrt.f32 %v336_v14  ;;  %vm343_vm2 = vweird.f32 %v336_v14 }
 0x12f   : > { %v1677_v15 = vpop.eup %1676 }
 0x130   : > { %v338_v16 = vmul.f32 %v1677_v15, %v336_v14  ;;  %vm344_vm1 = vweird.f32 %v1677_v15 }
 0x131   : > { %vm345_vm3 = vmor %vm343_vm2, %vm344_vm1 }
 0x132   : > { %v339_v17 = vmul.f32 %v1677_v15, %v338_v16 }
 0x134   : > { %v340_v18 = vmul.f32 0.5, %v339_v17 }
 0x136   : > { %v341_v19 = vsub.f32 1.5, %v340_v18 }
 0x138   : > { %v342_v20 = vmul.f32 %v1677_v15, %v341_v19 }
 0x13a   : > { %v346_v22 = vsel %vm345_vm3, %v1677_v15, %v342_v20 }
 0x13b   : > { %v347_v23 = vmul.f32 %v346_v22, %v331_v10 }
 0x13d   : > { %v351_v25 = vmul.f32 %v1671_v21, %v347_v23 }
 0x13f   : > { %v355_v26 = vadd.f32 %v1672_v24, %v351_v25 }
 0x141   : > { %v356_v27 = vpack.c.bf16 %v355_v26, %v355_v26 }
 0x143   : > { %556 = vmatpush.bf16.xpose.msra.mxu0 %v356_v27  ;;  %1579 = vmatpush.bf16.xpose.msra.mxu1 %v356_v27 }
 0x144   : > { %1580 = vmatpush.bf16.xpose.msra.mxu2 %v356_v27  ;;  %1581 = vmatpush.bf16.xpose.msra.mxu3 %v356_v27 }
 0x14a   : > { %557 = vmatmul.bf16.vlgmr.msra.gmra.mxu0 %v1547_v28  ;;  %602 = vmatmul.bf16.vlgmr.msra.gmra.mxu1 %v1556_v33 }
 0x14b   : > { %627 = vmatmul.bf16.vlgmr.msra.gmra.mxu2 %v1561_v55 }
 0x15a   : > { %562 = vmatmul.bf16.gmra.mxu0 %v1548_v29  ;;  %607 = vmatmul.bf16.gmra.mxu1 %v1557_v35 }
 0x15b   : > { %632 = vmatmul.bf16.gmra.mxu2 %v1562_v8  ;;  %v1568_v8 = vld [vmem:[#allocation7 + $0xa8] sm:$0xff] }
 0x16a   : > { %567 = vmatmul.bf16.gmra.mxu0 %v1549_v30  ;;  %612 = vmatmul.bf16.gmra.mxu1 %v1558_v37 }
 0x17a   : > { %572 = vmatmul.bf16.gmra.mxu0 %v1550_v31  ;;  %617 = vmatmul.bf16.gmra.mxu1 %v1559_v39 }
 0x18a   : > { %577 = vmatmul.bf16.gmra.mxu0 %v1551_v32  ;;  %622 = vmatmul.bf16.gmra.mxu1 %v1560_v41 }
 0x19a   : > { %582 = vmatmul.bf16.gmra.mxu0 %v1552_v34 }
 0x1aa   : > { %587 = vmatmul.bf16.gmra.mxu0 %v1553_v36 }
 0x1ba   : > { %592 = vmatmul.bf16.gmra.mxu0 %v1554_v38 }
 0x1c7   : > { %v558_v40 = vpop.f32.mrf.mxu0  ;;  %v603_v10 = vpop.f32.mrf.mxu1 }
 0x1c8   : > { %v678_v47 = vpack.c.bf16 %v558_v40, %v558_v40  ;;  %v696_v15 = vpack.c.bf16 %v603_v10, %v603_v10 }
 0x1ca   : > { %v730_v52 = vunpack.c.l.b16 %v678_v47  ;;  %597 = vmatmul.bf16.gmra.mxu0 %v1555_v56  ;;  %v760_v18 = vunpack.c.l.b16 %v696_v15  ;;  %v1569_v15 = vld [vmem:[#allocation7 + $0xb0] sm:$0xff] }
 0x1cf   : > { %v560_v42 = vpop.f32.mrf.mxu0  ;;  %v605_v12 = vpop.f32.mrf.mxu1 }
 0x1d0   : > { %v679_v46 = vpack.c.bf16 %v560_v42, %v560_v42  ;;  %v697_v16 = vpack.c.bf16 %v605_v12, %v605_v12 }
 0x1d2   : > { %v731_v50 = vunpack.c.l.b16 %v679_v46  ;;  %v761_v19 = vunpack.c.l.b16 %v697_v16 }
 0x1d4   : > { %v734_v57 = vpack.c.b16 %v731_v50, %v730_v52  ;;  %v763_v21 = vpack.c.b16 %v761_v19, %v760_v18  ;;  %v628_v18 = vpop.f32.mrf.mxu2 }
 0x1d6   : > { %776 = vmatpush.bf16.msrb.mxu1 %v763_v21 }
 0x1d7   : > { %v563_v43 = vpop.f32.mrf.mxu0  ;;  %v608_v14 = vpop.f32.mrf.mxu1 }
 0x1d8   : > { %v680_v61 = vpack.c.bf16 %v563_v43, %v563_v43  ;;  %v698_v34 = vpack.c.bf16 %v608_v14, %v608_v14  ;;  %v1565_v14 = vld [vmem:[#allocation7 + $0x90] sm:$0xff] }
 0x1da   : > { %v732_v3 = vunpack.c.l.b16 %v680_v61  ;;  %v815_v42 = vunpack.c.l.b16 %v698_v34 }
 0x1df   : > { %v565_v44 = vpop.f32.mrf.mxu0  ;;  %v610_v20 = vpop.f32.mrf.mxu1 }
 0x1e0   : > { %v681_v60 = vpack.c.bf16 %v565_v44, %v565_v44  ;;  %v699_v35 = vpack.c.bf16 %v610_v20, %v610_v20 }
 0x1e2   : > { %v733_v1 = vunpack.c.l.b16 %v681_v60  ;;  %v816_v43 = vunpack.c.l.b16 %v699_v35 }
 0x1e4   : > { %v735_v6 = vpack.c.b16 %v733_v1, %v732_v3  ;;  %v819_v47 = vpack.c.b16 %v816_v43, %v815_v42  ;;  %v1564_v1 = vld [vmem:[#allocation7 + $0x88] sm:$0xff] }
 0x1e7   : > { %v568_v45 = vpop.f32.mrf.mxu0  ;;  %v613_v24 = vpop.f32.mrf.mxu1 }
 0x1e8   : > { %v682_v48 = vpack.c.bf16 %v568_v45, %v568_v45  ;;  %v700_v30 = vpack.c.bf16 %v613_v24, %v613_v24  ;;  %v1566_v45 = vld [vmem:[#allocation7 + $0x98] sm:$0xff]  ;;  %v630_v24 = vpop.f32.mrf.mxu2 }
 0x1e9   : > { %652 = vmatmul.bf16.vlgmr.msra.gmra.mxu3 %v1566_v45 }
 0x1ea   : > { %v787_v53 = vunpack.c.l.b16 %v682_v48  ;;  %v817_v39 = vunpack.c.l.b16 %v700_v30 }
 0x1ef   : > { %v570_v49 = vpop.f32.mrf.mxu0  ;;  %v615_v38 = vpop.f32.mrf.mxu1 }
 0x1f0   : > { %v683_v51 = vpack.c.bf16 %v570_v49, %v570_v49  ;;  %v701_v40 = vpack.c.bf16 %v615_v38, %v615_v38 }
 0x1f2   : > { %v788_v54 = vunpack.c.l.b16 %v683_v51  ;;  %v818_v44 = vunpack.c.l.b16 %v701_v40 }
 0x1f4   : > { %v791_v58 = vpack.c.b16 %v788_v54, %v787_v53  ;;  %v820_v46 = vpack.c.b16 %v818_v44, %v817_v39  ;;  %v1563_v53 = vld [vmem:[#allocation7 + $0x80] sm:$0xff] }
 0x1f5   : > { %637 = vmatmul.bf16.gmra.mxu2 %v1563_v53 }
 0x1f6   : > { %1663 = vxpose.binary.xlu1.c.b16.start [1/4] (short) (narrow) %v791_v58, %v734_v57, 16 }
 0x1f7   : > { %v573_v59 = vpop.f32.mrf.mxu0  ;;  %832 = vmatpush.bf16.msrb.mxu2 %v820_v46  ;;  %v618_v49 = vpop.f32.mrf.mxu1 }
 0x1f8   : > { %v684_v62 = vpack.c.bf16 %v573_v59, %v573_v59  ;;  %v702_v3 = vpack.c.bf16 %v618_v49, %v618_v49 }
 0x1fa   : > { %v789_v4 = vunpack.c.l.b16 %v684_v62  ;;  %v1567_v62 = vld [vmem:[#allocation7 + $0xa0] sm:$0xff] }
 0x1fb   : > { %833 = vmatpush.bf16.msrb.mxu2 %v819_v47  ;;  %657 = vmatmul.bf16.gmra.mxu3 %v1567_v62 }
 0x1ff   : > { %v575_v63 = vpop.f32.mrf.mxu0  ;;  %v620_v61 = vpop.f32.mrf.mxu1 }
 0x200   : > { %v685_v2 = vpack.c.bf16 %v575_v63, %v575_v63 }
 0x202   : > { %v790_v5 = vunpack.c.l.b16 %v685_v2 }
 0x204   : > { %v792_v7 = vpack.c.b16 %v790_v5, %v789_v4  ;;  %v703_v4 = vpack.c.bf16 %v620_v61, %v620_v61 }
 0x205   : > { %642 = vmatmul.bf16.gmra.mxu2 %v1564_v1 }
 0x206   : > { %1664 = vxpose.binary.xlu1.c.b16.end [2/4] (short) (narrow) %v792_v7, %v735_v6, 16  ;;  %v872_v10 = vunpack.c.l.b16 %v703_v4 }
 0x207   : > { %v578_v9 = vpop.f32.mrf.mxu0  ;;  %v623_v63 = vpop.f32.mrf.mxu1 }
 0x208   : > { %v686_v25 = vpack.c.bf16 %v578_v9, %v578_v9  ;;  %v704_v2 = vpack.c.bf16 %v623_v63, %v623_v63  ;;  %v871_v9 = vunpack.c.l.b16 %v702_v3 }
 0x20a   : > { %v843_v31 = vunpack.c.l.b16 %v686_v25  ;;  %v873_v6 = vunpack.c.l.b16 %v704_v2  ;;  %v633_v25 = vpop.f32.mrf.mxu2 }
 0x20b   : > { %662 = vmatmul.bf16.gmra.mxu3 %v1568_v8 }
 0x20f   : > { %v580_v11 = vpop.f32.mrf.mxu0  ;;  %v625_v5 = vpop.f32.mrf.mxu1 }
 0x210   : > { %v687_v23 = vpack.c.bf16 %v580_v11, %v580_v11  ;;  %v705_v7 = vpack.c.bf16 %v625_v5, %v625_v5 }
 0x212   : > { %v844_v28 = vunpack.c.l.b16 %v687_v23  ;;  %v874_v11 = vunpack.c.l.b16 %v705_v7  ;;  %v635_v30 = vpop.f32.mrf.mxu2 }
 0x214   : > { %v847_v36 = vpack.c.b16 %v844_v28, %v843_v31  ;;  %v876_v12 = vpack.c.b16 %v874_v11, %v873_v6  ;;  %v706_v28 = vpack.c.bf16 %v628_v18, %v628_v18 }
 0x215   : > { %647 = vmatmul.bf16.gmra.mxu2 %v1565_v14 }
 0x216   : > { %888 = vmatpush.bf16.msrb.mxu3 %v876_v12 }
 0x217   : > { %v583_v13 = vpop.f32.mrf.mxu0 }
 0x218   : > { %v688_v50 = vpack.c.bf16 %v583_v13, %v583_v13  ;;  %v875_v13 = vpack.c.b16 %v872_v10, %v871_v9 }
 0x21a   : > { %v845_v56 = vunpack.c.l.b16 %v688_v50  ;;  %889 = vmatpush.bf16.msrb.mxu3 %v875_v13 }
 0x21b   : > { %667 = vmatmul.bf16.gmra.mxu3 %v1569_v15 }
 0x21f   : > { %v585_v17 = vpop.f32.mrf.mxu0 }
 0x220   : > { %v689_v48 = vpack.c.bf16 %v585_v17, %v585_v17 }
 0x222   : > { %v846_v54 = vunpack.c.l.b16 %v689_v48 }
 0x224   : > { %v848_v59 = vpack.c.b16 %v846_v54, %v845_v56 }
 0x227   : > { %v588_v22 = vpop.f32.mrf.mxu0 }
 0x228   : > { %v690_v26 = vpack.c.bf16 %v588_v22, %v588_v22 }
 0x22a   : > { %v899_v32 = vunpack.c.l.b16 %v690_v26  ;;  %v1570_v26 = vld [vmem:[#allocation7 + $0xb8] sm:$0xff] }
 0x22b   : > { %672 = vmatmul.bf16.gmra.mxu3 %v1570_v26 }
 0x22f   : > { %v590_v27 = vpop.f32.mrf.mxu0 }
 0x230   : > { %v691_v29 = vpack.c.bf16 %v590_v27, %v590_v27  ;;  %v708_v27 = vpack.c.bf16 %v633_v25, %v633_v25 }
 0x232   : > { %v900_v33 = vunpack.c.l.b16 %v691_v29  ;;  %v707_v29 = vpack.c.bf16 %v630_v24, %v630_v24  ;;  %v929_v31 = vunpack.c.l.b16 %v708_v27 }
 0x234   : > { %v903_v37 = vpack.c.b16 %v900_v33, %v899_v32  ;;  %v709_v32 = vpack.c.bf16 %v635_v30, %v635_v30  ;;  %v927_v33 = vunpack.c.l.b16 %v706_v28  ;;  %v928_v34 = vunpack.c.l.b16 %v707_v29 }
 0x236   : > { %1667 = vxpose.binary.xlu2.c.b16.start [1/4] (short) (narrow) %v903_v37, %v847_v36, 16  ;;  %v930_v35 = vunpack.c.l.b16 %v709_v32  ;;  %v931_v37 = vpack.c.b16 %v928_v34, %v927_v33 }
 0x237   : > { %v593_v41 = vpop.f32.mrf.mxu0 }
 0x238   : > { %v692_v51 = vpack.c.bf16 %v593_v41, %v593_v41  ;;  %v932_v36 = vpack.c.b16 %v930_v35, %v929_v31 }
 0x23a   : > { %v901_v57 = vunpack.c.l.b16 %v692_v51 }
 0x23f   : > { %v595_v52 = vpop.f32.mrf.mxu0 }
 0x240   : > { %v693_v55 = vpack.c.bf16 %v595_v52, %v595_v52 }
 0x242   : > { %v902_v58 = vunpack.c.l.b16 %v693_v55 }
 0x244   : > { %v904_v60 = vpack.c.b16 %v902_v58, %v901_v57 }
 0x246   : > { %1668 = vxpose.binary.xlu2.c.b16.end [2/4] (short) (narrow) %v904_v60, %v848_v59, 16 }
 0x247   : > { %v598_v16 = vpop.f32.mrf.mxu0 }
 0x248   : > { %v694_v17 = vpack.c.bf16 %v598_v16, %v598_v16 }
 0x24a   : > { %v758_v20 = vunpack.c.l.b16 %v694_v17 }
 0x24f   : > { %v600_v19 = vpop.f32.mrf.mxu0 }
 0x250   : > { %v695_v21 = vpack.c.bf16 %v600_v19, %v600_v19 }
 0x252   : > { %v759_v22 = vunpack.c.l.b16 %v695_v21 }
 0x254   : > { %v762_v23 = vpack.c.b16 %v759_v22, %v758_v20 }
 0x256   : > { %777 = vmatpush.bf16.msrb.mxu1 %v762_v23 }
 0x25a   : > { %944 = vmatpush.bf16.msra.mxu1 %v932_v36 }
 0x25e   : > { %945 = vmatpush.bf16.msra.mxu1 %v931_v37 }
 0x26c   : > { %v653_v40 = vpop.f32.mrf.mxu3 }
 0x26d   : > { %v716_v41 = vpack.c.bf16 %v653_v40, %v653_v40 }
 0x26f   : > { %v1042_v43 = vunpack.c.l.b16 %v716_v41 }
 0x274   : > { %v655_v42 = vpop.f32.mrf.mxu3 }
 0x275   : > { %v717_v44 = vpack.c.bf16 %v655_v42, %v655_v42 }
 0x277   : > { %v1043_v45 = vunpack.c.l.b16 %v717_v44 }
 0x278   : > { %v638_v48 = vpop.f32.mrf.mxu2 }
 0x279   : > { %v1045_v46 = vpack.c.b16 %v1043_v45, %v1042_v43  ;;  %v710_v4 = vpack.c.bf16 %v638_v48, %v638_v48 }
 0x27b   : > { %v1053_v47 = vsel %vm955_vm5, %v1045_v46, 0  ;;  %v1008_v10 = vunpack.c.l.b16 %v710_v4 }
 0x27c   : > { %1061 = vmatpush.bf16.xpose.msra.mxu3 %v1053_v47 }
 0x27e   : > { %v658_v50 = vpop.f32.mrf.mxu3 }
 0x27f   : > { %v718_v5 = vpack.c.bf16 %v658_v50, %v658_v50 }
 0x280   : > { %v640_v51 = vpop.f32.mrf.mxu2 }
 0x281   : > { %v711_v6 = vpack.c.bf16 %v640_v51, %v640_v51  ;;  %v1072_v11 = vunpack.c.l.b16 %v718_v5 }
 0x283   : > { %v1009_v12 = vunpack.c.l.b16 %v711_v6 }
 0x285   : > { %v1012_v18 = vpack.c.b16 %v1009_v12, %v1008_v10 }
 0x286   : > { %v660_v53 = vpop.f32.mrf.mxu3 }
 0x287   : > { %v719_v7 = vpack.c.bf16 %v660_v53, %v660_v53  ;;  %v1018_v24 = vsel %vm955_vm5, %v1012_v18, 0 }
 0x288   : > { %v643_v54 = vpop.f32.mrf.mxu2 }
 0x289   : > { %v712_v58 = vpack.c.bf16 %v643_v54, %v643_v54  ;;  %v1073_v13 = vunpack.c.l.b16 %v719_v7 }
 0x28b   : > { %v1010_v63 = vunpack.c.l.b16 %v712_v58  ;;  %v1076_v19 = vpack.c.b16 %v1073_v13, %v1072_v11 }
 0x28d   : > { %v1082_v25 = vsel %vm955_vm5, %v1076_v19, 0 }
 0x28e   : > { %v663_v55 = vpop.f32.mrf.mxu3 }
 0x28f   : > { %v720_v59 = vpack.c.bf16 %v663_v55, %v663_v55 }
 0x290   : > { %v645_v56 = vpop.f32.mrf.mxu2 }
 0x291   : > { %v713_v60 = vpack.c.bf16 %v645_v56, %v645_v56  ;;  %v1074_v1 = vunpack.c.l.b16 %v720_v59 }
 0x293   : > { %v1011_v2 = vunpack.c.l.b16 %v713_v60 }
 0x295   : > { %v1013_v8 = vpack.c.b16 %v1011_v2, %v1010_v63 }
 0x296   : > { %v665_v57 = vpop.f32.mrf.mxu3 }
 0x297   : > { %v721_v61 = vpack.c.bf16 %v665_v57, %v665_v57  ;;  %v1021_v15 = vsel %vm955_vm5, %v1013_v8, 0 }
 0x298   : > { %v648_v62 = vpop.f32.mrf.mxu2  ;;  %1029 = vmatpush.bf16.xpose.msra.mxu2 %v1021_v15 }
 0x299   : > { %v1075_v3 = vunpack.c.l.b16 %v721_v61  ;;  %v714_v20 = vpack.c.bf16 %v648_v62, %v648_v62 }
 0x29b   : > { %v1077_v9 = vpack.c.b16 %v1075_v3, %v1074_v1  ;;  %v1040_v22 = vunpack.c.l.b16 %v714_v20 }
 0x29d   : > { %v1085_v16 = vsel %vm955_vm5, %v1077_v9, 0 }
 0x29e   : > { %v668_v14 = vpop.f32.mrf.mxu3 }
 0x29f   : > { %v722_v32 = vpack.c.bf16 %v668_v14, %v668_v14 }
 0x2a0   : > { %v650_v17 = vpop.f32.mrf.mxu2  ;;  %1030 = vmatpush.bf16.xpose.msra.mxu2 %v1018_v24  ;;  %v1572_v24 = vld [vmem:[#allocation8 + $0x8] sm:$0xff] }
 0x2a1   : > { %v715_v21 = vpack.c.bf16 %v650_v17, %v650_v17 }
 0x2a2   : > { %v1665_v38 = vpop.trf.xlu1 }
 0x2a3   : > { %1499 = vmatmul.msk.bf16.vlgmr.msrb.gmra.mxu1 %vm766_vm4, %v1665_v38  ;;  %v1041_v23 = vunpack.c.l.b16 %v715_v21 }
 0x2a4   : > { %1093 = vmatpush.bf16.xpose.msrb.mxu1 %v1085_v16 }
 0x2a5   : > { %v1044_v27 = vpack.c.b16 %v1041_v23, %v1040_v22 }
 0x2a6   : > { %v670_v26 = vpop.f32.mrf.mxu3 }
 0x2a7   : > { %v1050_v28 = vsel %vm955_vm5, %v1044_v27, 0  ;;  %v723_v33 = vpack.c.bf16 %v670_v26, %v670_v26 }
 0x2a8   : > { %1062 = vmatpush.bf16.xpose.msra.mxu3 %v1050_v28 }
 0x2a9   : > { %v1105_v40 = vunpack.c.l.b16 %v723_v33  ;;  %v1571_v33 = vld [vmem:[#allocation8] sm:$0xff] }
 0x2aa   : > { %v1666_v39 = vpop.trf.xlu1 }
 0x2ab   : > { %1500 = vmatmul.msk.bf16.vlgmr.msrb.gmra.mxu2 %vm766_vm4, %v1666_v39  ;;  %v1104_v39 = vunpack.c.l.b16 %v722_v32 }
 0x2ac   : > { %1094 = vmatpush.bf16.xpose.msrb.mxu1 %v1082_v25 }
 0x2ad   : > { %v1108_v44 = vpack.c.b16 %v1105_v40, %v1104_v39  ;;  %v1577_v39 = vld [vmem:[#allocation8 + $0x30] sm:$0xff] }
 0x2ae   : > { %v673_v29 = vpop.f32.mrf.mxu3 }
 0x2af   : > { %v724_v30 = vpack.c.bf16 %v673_v29, %v673_v29  ;;  %v1114_v46 = vsel %vm955_vm5, %v1108_v44, 0 }
 0x2b1   : > { %v1106_v34 = vunpack.c.l.b16 %v724_v30 }
 0x2b6   : > { %v675_v31 = vpop.f32.mrf.mxu3 }
 0x2b7   : > { %v725_v35 = vpack.c.bf16 %v675_v31, %v675_v31 }
 0x2b9   : > { %v1107_v36 = vunpack.c.l.b16 %v725_v35  ;;  %v1573_v35 = vld [vmem:[#allocation8 + $0x10] sm:$0xff] }
 0x2bb   : > { %v1109_v41 = vpack.c.b16 %v1107_v36, %v1106_v34  ;;  %v1574_v34 = vld [vmem:[#allocation8 + $0x18] sm:$0xff]  ;;  %v1576_v36 = vld [vmem:[#allocation8 + $0x28] sm:$0xff] }
 0x2bd   : > { %v1117_v43 = vsel %vm955_vm5, %v1109_v41, 0 }
 0x2be   : > { %1125 = vmatpush.bf16.xpose.msrb.mxu2 %v1117_v43 }
 0x2c6   : > { %1126 = vmatpush.bf16.xpose.msrb.mxu2 %v1114_v46 }
 0x2d7   : > { %v1669_v49 = vpop.trf.xlu2 }
 0x2d8   : > { %1501 = vmatmul.msk.bf16.vlgmr.msrb.gmra.mxu3 %vm766_vm4, %v1669_v49 }
 0x2d9   : > { %1173 = vmatpush.bf16.msrb.mxu3 %v1572_v24 }
 0x2dd   : > { %1174 = vmatpush.bf16.msrb.mxu3 %v1571_v33 }
 0x2df   : > { %v1670_v52 = vpop.trf.xlu2 }
 0x2e0   : > { %1502 = vmatmul.msk.bf16.vlgmr.msra.gmra.mxu1 %vm766_vm4, %v1670_v52 }
 0x2e1   : > { %1201 = vmatpush.bf16.msra.mxu1 %v1574_v34 }
 0x2e5   : > { %1202 = vmatpush.bf16.msra.mxu1 %v1573_v35 }
 0x320   : > { %v779_v37 = vpop.f32.mrf.mxu1 }
 0x321   : > { %v951_v38 = vmul.f32 0.17677669, %v779_v37  ;;  %v1578_v37 = vld [vmem:[#allocation8 + $0x38] sm:$0xff] }
 0x323   : > { %v956_v42 = vsel %vm955_vm5, %v951_v38, -inf }
 0x324   : > { %957 = vmax.xlane.f32.xlu0 %v956_v42 }
 0x328   : > { %v781_v45 = vpop.f32.mrf.mxu1 }
 0x32e   : > { %v835_v47 = vpop.f32.mrf.mxu2 }
 0x32f   : > { %v952_v48 = vmul.f32 0.17677669, %v835_v47 }
 0x331   : > { %v959_v49 = vsel %vm955_vm5, %v952_v48, -inf }
 0x332   : > { %960 = vmax.xlane.f32.xlu1 %v959_v49 }
 0x336   : > { %v837_v50 = vpop.f32.mrf.mxu2 }
 0x35b   : > { %v891_v51 = vpop.f32.mrf.mxu3 }
 0x35c   : > { %v953_v52 = vmul.f32 0.17677669, %v891_v51 }
 0x35d   : > { %v947_v53 = vpop.f32.mrf.mxu1 }
 0x35e   : > { %v954_v54 = vmul.f32 0.17677669, %v947_v53  ;;  %v962_v55 = vsel %vm955_vm5, %v953_v52, -inf }
 0x35f   : > { %963 = vmax.xlane.f32.xlu2 %v962_v55 }
 0x360   : > { %v965_v56 = vsel %vm955_vm5, %v954_v54, -inf }
 0x361   : > { %966 = vmax.xlane.f32.xlu0 %v965_v56 }
 0x363   : > { %v893_v57 = vpop.f32.mrf.mxu3 }
 0x365   : > { %v949_v58 = vpop.f32.mrf.mxu1 }
 0x397   : > { %v958_v59 = vpop.xlane.xlu0 %957 }
 0x398   : > { %v968_v60 = vsub.f32 %v951_v38, %v958_v59  ;;  %v1575_v38 = vld [vmem:[#allocation8 + $0x20] sm:$0xff] }
 0x39a   : > { %v972_v61 = vmul.f32 1.442695, %v968_v60  ;;  %v1673_v60 = vld [vmem:[%s2137_s5] ss:$0 sm:$0xff] }
 0x39c   : > { %1678 = vpow2.f32 %v972_v61 }
 0x3a2   : > { %v1679_v62 = vpop.eup %1678 }
 0x3a3   : > { %v980_v63 = vsel %vm955_vm5, %v1679_v62, 0.0 }
 0x3a4   : > { %981 = vadd.xlane.f32.xlu0 %v980_v63 }
 0x3a5   : > { %v961_v1 = vpop.xlane.xlu1 %960 }
 0x3a6   : > { %v969_v2 = vsub.f32 %v952_v48, %v961_v1 }
 0x3a8   : > { %v974_v3 = vmul.f32 1.442695, %v969_v2 }
 0x3aa   : > { %1680 = vpow2.f32 %v974_v3 }
 0x3b0   : > { %v1681_v4 = vpop.eup %1680 }
 0x3b1   : > { %v983_v5 = vsel %vm955_vm5, %v1681_v4, 0.0 }
 0x3b2   : > { %984 = vadd.xlane.f32.xlu0 %v983_v5 }
 0x3d2   : > { %v964_v6 = vpop.xlane.xlu2 %963 }
 0x3d3   : > { %v970_v9 = vsub.f32 %v953_v52, %v964_v6 }
 0x3d4   : > { %v967_v7 = vpop.xlane.xlu0 %966 }
 0x3d5   : > { %v971_v8 = vsub.f32 %v954_v54, %v967_v7  ;;  %v976_v11 = vmul.f32 1.442695, %v970_v9 }
 0x3d7   : > { %v978_v10 = vmul.f32 1.442695, %v971_v8 }
 0x3d9   : > { %1682 = vpow2.f32 %v978_v10 }
 0x3da   : > { %1684 = vpow2.f32 %v976_v11 }
 0x3df   : > { %v1683_v12 = vpop.eup %1682 }
 0x3e0   : > { %v989_v13 = vsel %vm955_vm5, %v1683_v12, 0.0  ;;  %v1685_v14 = vpop.eup %1684 }
 0x3e1   : > { %990 = vadd.xlane.f32.xlu0 %v989_v13  ;;  %v986_v15 = vsel %vm955_vm5, %v1685_v14, 0.0 }
 0x3e9   : > { %987 = vadd.xlane.f32.xlu0 %v986_v15 }
 0x417   : > { %v982_v16 = vpop.xlane.xlu0 %981 }
 0x418   : > { %1686 = vrcp.f32 %v982_v16 }
 0x41e   : > { %v1687_v17 = vpop.eup %1686 }
 0x41f   : > { %v996_v18 = vmul.f32 %v1687_v17, %v1679_v62 }
 0x421   : > { %v1000_v19 = vpack.c.bf16 %v996_v18, %v996_v18 }
 0x423   : > { %1503 = vmatmul.msk.bf16.vlgmr.msra.gmra.mxu2 %vm955_vm5, %v1000_v19 }
 0x424   : > { %1229 = vmatpush.bf16.msra.mxu2 %v1576_v36 }
 0x425   : > { %v985_v20 = vpop.xlane.xlu0 %984 }
 0x426   : > { %1688 = vrcp.f32 %v985_v20 }
 0x428   : > { %1230 = vmatpush.bf16.msra.mxu2 %v1575_v38 }
 0x42c   : > { %v1689_v21 = vpop.eup %1688 }
 0x42d   : > { %v997_v22 = vmul.f32 %v1689_v21, %v1681_v4 }
 0x42f   : > { %v1001_v23 = vpack.c.bf16 %v997_v22, %v997_v22 }
 0x431   : > { %1504 = vmatmul.msk.bf16.vlgmr.msra.gmra.mxu3 %vm955_vm5, %v1001_v23 }
 0x432   : > { %1257 = vmatpush.bf16.msra.mxu3 %v1578_v37 }
 0x436   : > { %1258 = vmatpush.bf16.msra.mxu3 %v1577_v39 }
 0x454   : > { %v991_v25 = vpop.xlane.xlu0 %990 }
 0x455   : > { %1690 = vrcp.f32 %v991_v25 }
 0x45b   : > { %v1691_v26 = vpop.eup %1690 }
 0x45c   : > { %v999_v27 = vmul.f32 %v1691_v26, %v1683_v12  ;;  %v988_v28 = vpop.xlane.xlu0 %987 }
 0x45d   : > { %1692 = vrcp.f32 %v988_v28 }
 0x45e   : > { %v1003_v29 = vpack.c.bf16 %v999_v27, %v999_v27 }
 0x460   : > { %1506 = vmatmul.msk.bf16.vlgmr.msrb.gmra.mxu2 %vm955_vm5, %v1003_v29 }
 0x463   : > { %v1693_v30 = vpop.eup %1692 }
 0x464   : > { %v998_v31 = vmul.f32 %v1693_v30, %v1685_v14 }
 0x466   : > { %v1002_v32 = vpack.c.bf16 %v998_v31, %v998_v31 }
 0x468   : > { %1505 = vmatmul.msk.bf16.vlgmr.msrb.gmra.mxu1 %vm955_vm5, %v1002_v32 }
 0x4a6   : > { %v1032_v40 = vpop.f32.mrf.mxu2 }
 0x4a7   : > { %v1132_v41 = vpack.c.bf16 %v1032_v40, %v1032_v40 }
 0x4a9   : > { %1515 = vmatmul.msk.bf16.vlgmr.msrb.gmra.mxu3 %vm766_vm4, %v1132_v41 }
 0x4ae   : > { %v1034_v42 = vpop.f32.mrf.mxu2 }
 0x4b4   : > { %v1064_v43 = vpop.f32.mrf.mxu3 }
 0x4b5   : > { %v1133_v44 = vpack.c.bf16 %v1064_v43, %v1064_v43 }
 0x4b7   : > { %1524 = vmatmul.msk.bf16.vlgmr.msra.gmra.mxu1 %vm766_vm4, %v1133_v44 }
 0x4bc   : > { %v1066_v45 = vpop.f32.mrf.mxu3 }
 0x4e3   : > { %v1128_v46 = vpop.f32.mrf.mxu2 }
 0x4e4   : > { %v1135_v47 = vpack.c.bf16 %v1128_v46, %v1128_v46 }
 0x4e5   : > { %v1096_v48 = vpop.f32.mrf.mxu1 }
 0x4e6   : > { %v1134_v49 = vpack.c.bf16 %v1096_v48, %v1096_v48  ;;  %1542 = vmatmul.msk.bf16.vlgmr.msra.gmra.mxu3 %vm766_vm4, %v1135_v47 }
 0x4e8   : > { %1533 = vmatmul.msk.bf16.vlgmr.msra.gmra.mxu2 %vm766_vm4, %v1134_v49 }
 0x4eb   : > { %v1130_v50 = vpop.f32.mrf.mxu2 }
 0x4ed   : > { %v1098_v51 = vpop.f32.mrf.mxu1 }
 0x52c   : > { %v1176_v52 = vpop.f32.mrf.mxu3 }
 0x534   : > { %v1178_v53 = vpop.f32.mrf.mxu3  ;;  %v1204_v54 = vpop.f32.mrf.mxu1 }
 0x535   : > { %v1264_v57 = vadd.f32 %v1204_v54, %v1176_v52 }
 0x53c   : > { %v1206_v55 = vpop.f32.mrf.mxu1 }
 0x569   : > { %v1260_v56 = vpop.f32.mrf.mxu3 }
 0x56b   : > { %v1232_v58 = vpop.f32.mrf.mxu2 }
 0x56c   : > { %v1265_v59 = vadd.f32 %v1264_v57, %v1232_v58 }
 0x56e   : > { %v1266_v61 = vadd.f32 %v1265_v59, %v1260_v56 }
 0x570   : > { %v1271_v62 = vadd.f32 %v1673_v60, %v1266_v61 }
 0x571   : > { %v1262_v63 = vpop.f32.mrf.mxu3 }
 0x572   : > { %v1272_v1 = vadd.f32 %v1271_v62, %v2058_v0 }
 0x573   : > { %v1234_v2 = vpop.f32.mrf.mxu2 }
 0x574   : > { %1273 = vst [vmem:[%s316_s14] sm:$0xff] %v1272_v1 }
 0x575   : > { %1841 = shalt.err (!%p1838_p11)
}
 0x576   : > { %1596 = dma.vmem_to_hbm [thread:$0]  (%p2013_p3), %s1288_s17, 128, %s1290_s18, %s1275_s25  }
 0x577 PF: > { %s1301_s13 = sand.u32 1, %s1876_s21   ;;  %p2145_p12 = scmp.ge.s32.totalorder %s1888_s24, 2 }
 0x578   : > { %s1302_s29 = scalar_lea.sflag [#allocation4], %s1301_s13 }
 0x579   : > { %p1613_p13 = pnand %p2145_p12, %p1966_p6 }
 0x57b   : > { %p1614_p0 = pneg %p1613_p13 }
 0x57d   : > { %1871 = dma.done.wait (%p1614_p0), %s1302_s29, 128  }
 0x57e   : > { %1873 = vsyncadd (%p1614_p0), %s1302_s29, 4294967168  ;;  %p21_p5 = scmp.ge.s32.totalorder %s2000_s7, 4   ;;  %s2146_s21 = smov %s1880_s22 }
 0x57f   : > { %s2147_s22 = smov %s1884_s23  ;;  %s2148_s23 = smov %s2009_s11 }
 0x580   : > { %s2149_s24 = smov %s2000_s7  ;;  %23 = sbr.rel (!%p21_p5) target bundleno = 7 (0x7), region = 101 }
 0x585   :  { %1308 = vsyncpa [#allocation3], 1 }
 0x586   :  { %1310 = vsyncpa [#allocation3 + $0x1], 1 }
 0x587   :  { %1311 = vsyncpa [#allocation6], 1 }
 0x588   :  { %1312 = vsyncpa [#allocation9], 1 }
 0x589   :  { %1313 = vsyncpa [#allocation4], 1 }
 0x58a   :  { %1315 = vsyncpa [#allocation4 + $0x1], 1 }

// kernel: tpu_custom_call.1
= control target key start
LH: loop header
LB: loop body
LE: loop exit
PB: predicated region body
PF: predicated region fallthrough
CT: control target
= control target key end

     0   :  { %11 = vsyncpa [#allocation3], 0  ;;  %s2132_s0 = inlined_call_operand.hbm [shape: f32[2,8,128], index: 0, kind: input, shape index: {}]   ;;  %s2133_s1 = inlined_call_operand.hbm [shape: f32[1,128], index: 1, kind: input, shape index: {}]   ;;  %s2134_s2 = inlined_call_operand.vmem [shape: f32[1,128], index: 2, kind: input, shape index: {}]   ;;  %s2135_s3 = inlined_call_operand.hbm [shape: bf16[384,128], index: 3, kind: input, shape index: {}]   ;;  %s2136_s4 = inlined_call_operand.hbm [shape: bf16[4,32,128], index: 4, kind: input, shape index: {}]   ;;  %s2137_s5 = inlined_call_operand.vmem [shape: f32[1,128], index: 5, kind: input, shape index: {}]   ;;  %s2138_s6 = inlined_call_operand.hbm [shape: f32[2,8,128], index: 6, kind: output, shape index: {}]  }
   0x1   :  { %13 = vsyncpa [#allocation3 + $0x1], 0 }
   0x2   :  { %14 = vsyncpa [#allocation6], 0 }
   0x3   :  { %15 = vsyncpa [#allocation9], 0 }
   0x4   :  { %16 = vsyncpa [#allocation4], 0 }
   0x5   :  { %18 = vsyncpa [#allocation4 + $0x1], 0  ;;  %s1931_s21 = smov 0   ;;  %s1933_s22 = smov 0  }
   0x6   :  { %s1935_s23 = smov 0   ;;  %s1937_s24 = smov 0  }
   0x7 LB: > { %s1952_s25 = sadd.s32 4294967295, %s1888_s24   ;;  %s1389_s26 = sadd.s32 4294967294, %s1888_s24   ;;  %s1888_s24 = sphi %s1937_s24, %s2149_s24   ;;  %s1884_s23 = sphi %s1935_s23, %s2148_s23   ;;  %s1880_s22 = sphi %s1933_s22, %s2147_s22   ;;  %s1876_s21 = sphi %s1931_s21, %s2146_s21  }
   0x8   : > { %p44_p0 = scmp.ne.s32.totalorder %s1880_s22, %s1876_s21  ;;  %p45_p1 = scmp.eq.s32.totalorder %s1952_s25, 0 }
   0x9   : > { %p173_p2 = scmp.eq.s32.totalorder %s1952_s25, 1  ;;  %p179_p3 = scmp.eq.s32.totalorder %s1389_s26, 1 }
   0xa   : > { %p1961_p4 = por %p45_p1, %p44_p0  ;;  %p1390_p5 = scmp.ge.s32.totalorder %s1888_s24, 1 }
   0xb   : > { %p1966_p6 = por %p179_p3, %p44_p0  ;;  %p186_p7 = scmp.lt.s32.totalorder %s1888_s24, 3 }
   0xc   : > { %s198_s7 = sshll.u32 %s2133_s1, 4  ;;  %s1890_s9 = smov [#allocation5]   ;;  %s199_s7 = int_to_ptr.hbm [resolvable:$true] %s198_s7 }
   0xd   : > { %p1974_p8 = pnand %p1390_p5, %p186_p7  ;;  %s200_s10 = sshll.u32 %s1890_s9, 4  ;;  %s201_s10 = int_to_ptr.vmem [resolvable:$true] %s200_s10 }
   0xe   : > { %s212_s13 = sshll.u32 %s2135_s3, 4  ;;  %s1891_s15 = smov [#allocation7]   ;;  %s213_s13 = int_to_ptr.hbm [resolvable:$true] %s212_s13 }
   0xf   : > { %p1598_p10 = pneg %p1974_p8  ;;  %s214_s16 = sshll.u32 %s1891_s15, 4  ;;  %s215_s16 = int_to_ptr.vmem [resolvable:$true] %s214_s16 }
  0x10   : > { %s1892_s17 = smov 64   ;;  %s1893_s18 = smov 4  }
  0x11   : > { %p1986_p11 = pnand %p1598_p10, %p45_p1  ;;  %s226_s26 = sshll.u32 %s2136_s4, 4  ;;  %s227_s26 = int_to_ptr.hbm [resolvable:$true] %s226_s26 }
  0x12   : > { %s1894_s29 = smov [#allocation8]   ;;  %p38_p13 = scmp.ne.s32.totalorder %s1884_s23, %s1880_s22 }
  0x13   : > { %1601 = dma.hbm_to_vmem [thread:$0]  (!%p1986_p11), %s199_s7, 16, %s201_s10, [#allocation6]  }
  0x14   : > { %1604 = dma.hbm_to_vmem [thread:$0]  (!%p1986_p11), %s213_s13, 3072, %s215_s16, [#allocation6], %s1892_s17, %s1892_s17, %s1893_s18  }
  0x15   : > { %s228_s30 = sshll.u32 %s1894_s29, 4  ;;  %s2000_s7 = sadd.s32 1, %s1888_s24   ;;  %s229_s30 = int_to_ptr.vmem [resolvable:$true] %s228_s30 }
  0x16   : > { %1607 = dma.hbm_to_vmem [thread:$0]  (!%p1986_p11), %s227_s26, 1024, %s229_s30, [#allocation9], %s1892_s17, %s1892_s17, %s1893_s18  }
  0x17   : > { %s28_s9 = ssub.s32 %s1888_s24, %s2000_s7  ;;  %s31_s10 = sadd.s32 1, %s1884_s23 }
  0x18   : > { %p29_p12 = scmp.eq.s32.totalorder %s28_s9, 0  ;;  %p39_p0 = scmp.eq.s32.totalorder %s1888_s24, 0 }
  0x19   : > { %p2013_p3 = por %p173_p2, %p38_p13  ;;  %p1619_p5 = scmp.lt.s32.totalorder %s1888_s24, 2 }
  0x1a   : > { %s2009_s11 = scalar_select %p29_p12, %s1884_s23, %s31_s10  }
  0x1b   : > { %s245_s13 = sand.u32 1, %s1884_s23   ;;  %s1396_s15 = sshll.u32 %s1888_s24, 3 }
  0x1c   : > { %p40_p7 = por %p39_p0, %p38_p13  ;;  %s1395_s14 = sshll.u32 %s245_s13, 3 }
  0x1d   : > { %s253_s18 = scalar_lea.hbm %s2132_s0, %s1396_s15  ;;  %s249_s20 = scalar_lea.vmem [#allocation2], %s1395_s14 }
  0x1e   : > { %s255_s19 = sshll.u32 %s253_s18, 4  ;;  %s257_s26 = sshll.u32 %s249_s20, 4  ;;  %s256_s19 = int_to_ptr.hbm [resolvable:$true] %s255_s19  ;;  %s258_s26 = int_to_ptr.vmem [resolvable:$true] %s257_s26 }
  0x1f   : > { %p2023_p10 = pnand %p1619_p5, %p40_p7  ;;  %s246_s30 = scalar_lea.sflag [#allocation3], %s245_s13 }
  0x20   : > { %s1784_s9 = sshra.s32 %s256_s19, 4  ;;  %s1791_s14 = scalar_lea.hbm %s2132_s0, 16  ;;  %s1785_s9 = int_to_ptr.hbm [resolvable:$true] %s1784_s9 }
  0x21   : > { %s1786_s10 = scalar_lea.hbm %s1785_s9, 8  ;;  %p1788_p11 = pneg %p2023_p10 }
  0x22   : > { %p1787_p2 = scmp.ne.s32.totalorder %s1785_s9, %s1786_s10  ;;  %p1792_p0 = scmp.lt.s32.totalorder %s1785_s9, %s2132_s0 }
  0x23   : > { %p1793_p5 = scmp.lt.s32.totalorder %s1791_s14, %s1786_s10 }
  0x24   : > { %p1789_p12 = pnand %p1788_p11, %p1787_p2 }
  0x25   : > { %p1794_p7 = por %p1793_p5, %p1792_p0 }
  0x26   : > { %p1790_p13 = pneg %p1789_p12 }
  0x28   : > { %p1795_p9 = pnand %p1794_p7, %p1790_p13 }
  0x2a   : > { %1798 = shalt.err (!%p1795_p9)
}
  0x2b   : > { %1611 = dma.hbm_to_vmem [thread:$0]  (!%p2023_p10), %s256_s19, 128, %s258_s26, %s246_s30  }
  0x2c   : > { %266 = sbr.rel (%p1974_p8) target bundleno = 1399 (0x577), region = 44  ;;  %s2040_s13 = sand.u32 (!%p1974_p8), 1, %s1880_s22  }
  0x2d   : > { %s1398_s20 = sshll.u32 (!%p1974_p8), %s2040_s13, 3  ;;  %s269_s15 = scalar_lea.sflag (!%p1974_p8), [#allocation3], %s2040_s13 }
  0x2e   : > { %s272_s9 = scalar_lea.vmem (!%p1974_p8), [#allocation2], %s1398_s20 }
  0x31   : > { %1859 = dma.done.wait (%p1961_p4), %s269_s15, 128  }
  0x32   : > { %1861 = vsyncadd (%p1961_p4), %s269_s15, 4294967168 }
  0x33   : > { %1863 = dma.done.wait (%p45_p1), [#allocation6], 3088  }
  0x34   : > { %1865 = vsyncadd (%p45_p1), [#allocation6], 4294964208 }
  0x35   : > { %1867 = dma.done.wait (%p45_p1), [#allocation9], 1024  }
  0x36   : > { %1869 = vsyncadd (%p45_p1), [#allocation9], 4294966272  ;;  %v2058_v0 = vld [vmem:[%s272_s9] sm:$0xff]  ;;  %v1895_v1 = vmov 128.0   ;;  %v1671_v21 = vld [vmem:[#allocation5] ss:$0 sm:$0xff] }
  0x37   : > { %321 = vadd.xlane.f32.xlu0 %v2058_v0  ;;  %1674 = vrcp.f32 %v1895_v1  ;;  %v1672_v24 = vld [vmem:[%s2134_s2] ss:$0 sm:$0xff]  ;;  %v1547_v28 = vld [vmem:[#allocation7] sm:$0xff]  ;;  %v1549_v30 = vld [vmem:[#allocation7 + $0x10] sm:$0xff]  ;;  %vm766_vm4 = vcmask 261120   ;;  %vm955_vm5 = vcmask 64512  }
  0x38   : > { %v1548_v29 = vld [vmem:[#allocation7 + $0x8] sm:$0xff]  ;;  %v1550_v31 = vld [vmem:[#allocation7 + $0x18] sm:$0xff]  ;;  %v1551_v32 = vld [vmem:[#allocation7 + $0x20] sm:$0xff]  ;;  %s1544_s19 = sshll.u32 %s1952_s25, 3  ;;  %s316_s14 = scalar_lea.vmem [#allocation10], %s1398_s20 }
  0x39   : > { %v1556_v33 = vld [vmem:[#allocation7 + $0x48] sm:$0xff]  ;;  %v1557_v35 = vld [vmem:[#allocation7 + $0x50] sm:$0xff]  ;;  %v1558_v37 = vld [vmem:[#allocation7 + $0x58] sm:$0xff]  ;;  %s1285_s16 = scalar_lea.hbm %s2138_s6, %s1544_s19  ;;  %s1287_s17 = sshll.u32 %s316_s14, 4  ;;  %s1288_s17 = int_to_ptr.vmem [resolvable:$true] %s1287_s17 }
  0x3a   : > { %v1552_v34 = vld [vmem:[#allocation7 + $0x28] sm:$0xff]  ;;  %v1553_v36 = vld [vmem:[#allocation7 + $0x30] sm:$0xff]  ;;  %v1554_v38 = vld [vmem:[#allocation7 + $0x38] sm:$0xff]  ;;  %s1289_s18 = sshll.u32 %s1285_s16, 4  ;;  %s1275_s25 = scalar_lea.sflag [#allocation4], %s2040_s13  ;;  %s1290_s18 = int_to_ptr.hbm [resolvable:$true] %s1289_s18 }
  0x3b   : > { %v1559_v39 = vld [vmem:[#allocation7 + $0x60] sm:$0xff]  ;;  %v1560_v41 = vld [vmem:[#allocation7 + $0x68] sm:$0xff]  ;;  %v1561_v55 = vld [vmem:[#allocation7 + $0x70] sm:$0xff]  ;;  %s1828_s15 = sshra.s32 %s1290_s18, 4  ;;  %s1834_s8 = scalar_lea.hbm %s2138_s6, 16  ;;  %s1829_s15 = int_to_ptr.hbm [resolvable:$true] %s1828_s15 }
  0x3c   : > { %v1555_v56 = vld [vmem:[#allocation7 + $0x40] sm:$0xff]  ;;  %s1830_s9 = scalar_lea.hbm %s1829_s15, 8  ;;  %p1835_p9 = scmp.lt.s32.totalorder %s1829_s15, %s2138_s6 }
  0x3d   : > { %v1675_v2 = vpop.eup %1674  ;;  %p1831_p1 = scmp.ne.s32.totalorder %s1829_s15, %s1830_s9  ;;  %p1836_p10 = scmp.lt.s32.totalorder %s1834_s8, %s1830_s9 }
  0x3e   : > { %v324_v3 = vmul.f32 128.0, %v1675_v2  ;;  %vm328_vm0 = vweird.f32 %v1675_v2 }
  0x3f   : > { %p1832_p4 = pnand %p1831_p1, %p2013_p3  ;;  %p1837_p2 = por %p1836_p10, %p1835_p9 }
  0x40   : > { %v325_v4 = vsub.f32 1.0, %v324_v3 }
  0x41   : > { %p1833_p8 = pneg %p1832_p4 }
  0x42   : > { %v326_v5 = vmul.f32 %v1675_v2, %v325_v4 }
  0x43   : > { %p1838_p11 = pnand %p1837_p2, %p1833_p8 }
  0x44   : > { %v327_v6 = vadd.f32 %v1675_v2, %v326_v5 }
  0x46   : > { %v329_v7 = vsel %vm328_vm0, %v1675_v2, %v327_v6 }
  0xaa   : > { %v322_v8 = vpop.xlane.xlu0 %321 }
  0xab   : > { %v330_v9 = vmul.f32 %v329_v7, %v322_v8  ;;  %v1562_v8 = vld [vmem:[#allocation7 + $0x78] sm:$0xff] }
  0xad   : > { %v331_v10 = vsub.f32 %v2058_v0, %v330_v9 }
  0xaf   : > { %v332_v11 = vmul.f32 %v331_v10, %v331_v10 }
  0xb1   : > { %333 = vadd.xlane.f32.xlu0 %v332_v11 }
 0x124   : > { %v334_v12 = vpop.xlane.xlu0 %333 }
 0x125   : > { %v335_v13 = vmul.f32 %v334_v12, %v329_v7 }
 0x127   : > { %v336_v14 = vadd.f32 1e-05, %v335_v13 }
 0x129   : > { %1676 = vrsqrt.f32 %v336_v14  ;;  %vm343_vm2 = vweird.f32 %v336_v14 }
 0x12f   : > { %v1677_v15 = vpop.eup %1676 }
 0x130   : > { %v338_v16 = vmul.f32 %v1677_v15, %v336_v14  ;;  %vm344_vm1 = vweird.f32 %v1677_v15 }
 0x131   : > { %vm345_vm3 = vmor %vm343_vm2, %vm344_vm1 }
 0x132   : > { %v339_v17 = vmul.f32 %v1677_v15, %v338_v16 }
 0x134   : > { %v340_v18 = vmul.f32 0.5, %v339_v17 }
 0x136   : > { %v341_v19 = vsub.f32 1.5, %v340_v18 }
 0x138   : > { %v342_v20 = vmul.f32 %v1677_v15, %v341_v19 }
 0x13a   : > { %v346_v22 = vsel %vm345_vm3, %v1677_v15, %v342_v20 }
 0x13b   : > { %v347_v23 = vmul.f32 %v346_v22, %v331_v10 }
 0x13d   : > { %v351_v25 = vmul.f32 %v1671_v21, %v347_v23 }
 0x13f   : > { %v355_v26 = vadd.f32 %v1672_v24, %v351_v25 }
 0x141   : > { %v356_v27 = vpack.c.bf16 %v355_v26, %v355_v26 }
 0x143   : > { %556 = vmatpush.bf16.xpose.msra.mxu0 %v356_v27  ;;  %1579 = vmatpush.bf16.xpose.msra.mxu1 %v356_v27 }
 0x144   : > { %1580 = vmatpush.bf16.xpose.msra.mxu2 %v356_v27  ;;  %1581 = vmatpush.bf16.xpose.msra.mxu3 %v356_v27 }
 0x14a   : > { %557 = vmatmul.bf16.vlgmr.msra.gmra.mxu0 %v1547_v28  ;;  %602 = vmatmul.bf16.vlgmr.msra.gmra.mxu1 %v1556_v33 }
 0x14b   : > { %627 = vmatmul.bf16.vlgmr.msra.gmra.mxu2 %v1561_v55 }
 0x15a   : > { %562 = vmatmul.bf16.gmra.mxu0 %v1548_v29  ;;  %607 = vmatmul.bf16.gmra.mxu1 %v1557_v35 }
 0x15b   : > { %632 = vmatmul.bf16.gmra.mxu2 %v1562_v8  ;;  %v1568_v8 = vld [vmem:[#allocation7 + $0xa8] sm:$0xff] }
 0x16a   : > { %567 = vmatmul.bf16.gmra.mxu0 %v1549_v30  ;;  %612 = vmatmul.bf16.gmra.mxu1 %v1558_v37 }
 0x17a   : > { %572 = vmatmul.bf16.gmra.mxu0 %v1550_v31  ;;  %617 = vmatmul.bf16.gmra.mxu1 %v1559_v39 }
 0x18a   : > { %577 = vmatmul.bf16.gmra.mxu0 %v1551_v32  ;;  %622 = vmatmul.bf16.gmra.mxu1 %v1560_v41 }
 0x19a   : > { %582 = vmatmul.bf16.gmra.mxu0 %v1552_v34 }
 0x1aa   : > { %587 = vmatmul.bf16.gmra.mxu0 %v1553_v36 }
 0x1ba   : > { %592 = vmatmul.bf16.gmra.mxu0 %v1554_v38 }
 0x1c7   : > { %v558_v40 = vpop.f32.mrf.mxu0  ;;  %v603_v10 = vpop.f32.mrf.mxu1 }
 0x1c8   : > { %v678_v47 = vpack.c.bf16 %v558_v40, %v558_v40  ;;  %v696_v15 = vpack.c.bf16 %v603_v10, %v603_v10 }
 0x1ca   : > { %v730_v52 = vunpack.c.l.b16 %v678_v47  ;;  %597 = vmatmul.bf16.gmra.mxu0 %v1555_v56  ;;  %v760_v18 = vunpack.c.l.b16 %v696_v15  ;;  %v1569_v15 = vld [vmem:[#allocation7 + $0xb0] sm:$0xff] }
 0x1cf   : > { %v560_v42 = vpop.f32.mrf.mxu0  ;;  %v605_v12 = vpop.f32.mrf.mxu1 }
 0x1d0   : > { %v679_v46 = vpack.c.bf16 %v560_v42, %v560_v42  ;;  %v697_v16 = vpack.c.bf16 %v605_v12, %v605_v12 }
 0x1d2   : > { %v731_v50 = vunpack.c.l.b16 %v679_v46  ;;  %v761_v19 = vunpack.c.l.b16 %v697_v16 }
 0x1d4   : > { %v734_v57 = vpack.c.b16 %v731_v50, %v730_v52  ;;  %v763_v21 = vpack.c.b16 %v761_v19, %v760_v18  ;;  %v628_v18 = vpop.f32.mrf.mxu2 }
 0x1d6   : > { %776 = vmatpush.bf16.msrb.mxu1 %v763_v21 }
 0x1d7   : > { %v563_v43 = vpop.f32.mrf.mxu0  ;;  %v608_v14 = vpop.f32.mrf.mxu1 }
 0x1d8   : > { %v680_v61 = vpack.c.bf16 %v563_v43, %v563_v43  ;;  %v698_v34 = vpack.c.bf16 %v608_v14, %v608_v14  ;;  %v1565_v14 = vld [vmem:[#allocation7 + $0x90] sm:$0xff] }
 0x1da   : > { %v732_v3 = vunpack.c.l.b16 %v680_v61  ;;  %v815_v42 = vunpack.c.l.b16 %v698_v34 }
 0x1df   : > { %v565_v44 = vpop.f32.mrf.mxu0  ;;  %v610_v20 = vpop.f32.mrf.mxu1 }
 0x1e0   : > { %v681_v60 = vpack.c.bf16 %v565_v44, %v565_v44  ;;  %v699_v35 = vpack.c.bf16 %v610_v20, %v610_v20 }
 0x1e2   : > { %v733_v1 = vunpack.c.l.b16 %v681_v60  ;;  %v816_v43 = vunpack.c.l.b16 %v699_v35 }
 0x1e4   : > { %v735_v6 = vpack.c.b16 %v733_v1, %v732_v3  ;;  %v819_v47 = vpack.c.b16 %v816_v43, %v815_v42  ;;  %v1564_v1 = vld [vmem:[#allocation7 + $0x88] sm:$0xff] }
 0x1e7   : > { %v568_v45 = vpop.f32.mrf.mxu0  ;;  %v613_v24 = vpop.f32.mrf.mxu1 }
 0x1e8   : > { %v682_v48 = vpack.c.bf16 %v568_v45, %v568_v45  ;;  %v700_v30 = vpack.c.bf16 %v613_v24, %v613_v24  ;;  %v1566_v45 = vld [vmem:[#allocation7 + $0x98] sm:$0xff]  ;;  %v630_v24 = vpop.f32.mrf.mxu2 }
 0x1e9   : > { %652 = vmatmul.bf16.vlgmr.msra.gmra.mxu3 %v1566_v45 }
 0x1ea   : > { %v787_v53 = vunpack.c.l.b16 %v682_v48  ;;  %v817_v39 = vunpack.c.l.b16 %v700_v30 }
 0x1ef   : > { %v570_v49 = vpop.f32.mrf.mxu0  ;;  %v615_v38 = vpop.f32.mrf.mxu1 }
 0x1f0   : > { %v683_v51 = vpack.c.bf16 %v570_v49, %v570_v49  ;;  %v701_v40 = vpack.c.bf16 %v615_v38, %v615_v38 }
 0x1f2   : > { %v788_v54 = vunpack.c.l.b16 %v683_v51  ;;  %v818_v44 = vunpack.c.l.b16 %v701_v40 }
 0x1f4   : > { %v791_v58 = vpack.c.b16 %v788_v54, %v787_v53  ;;  %v820_v46 = vpack.c.b16 %v818_v44, %v817_v39  ;;  %v1563_v53 = vld [vmem:[#allocation7 + $0x80] sm:$0xff] }
 0x1f5   : > { %637 = vmatmul.bf16.gmra.mxu2 %v1563_v53 }
 0x1f6   : > { %1663 = vxpose.binary.xlu1.c.b16.start [1/4] (short) (narrow) %v791_v58, %v734_v57, 16 }
 0x1f7   : > { %v573_v59 = vpop.f32.mrf.mxu0  ;;  %832 = vmatpush.bf16.msrb.mxu2 %v820_v46  ;;  %v618_v49 = vpop.f32.mrf.mxu1 }
 0x1f8   : > { %v684_v62 = vpack.c.bf16 %v573_v59, %v573_v59  ;;  %v702_v3 = vpack.c.bf16 %v618_v49, %v618_v49 }
 0x1fa   : > { %v789_v4 = vunpack.c.l.b16 %v684_v62  ;;  %v1567_v62 = vld [vmem:[#allocation7 + $0xa0] sm:$0xff] }
 0x1fb   : > { %833 = vmatpush.bf16.msrb.mxu2 %v819_v47  ;;  %657 = vmatmul.bf16.gmra.mxu3 %v1567_v62 }
 0x1ff   : > { %v575_v63 = vpop.f32.mrf.mxu0  ;;  %v620_v61 = vpop.f32.mrf.mxu1 }
 0x200   : > { %v685_v2 = vpack.c.bf16 %v575_v63, %v575_v63 }
 0x202   : > { %v790_v5 = vunpack.c.l.b16 %v685_v2 }
 0x204   : > { %v792_v7 = vpack.c.b16 %v790_v5, %v789_v4  ;;  %v703_v4 = vpack.c.bf16 %v620_v61, %v620_v61 }
 0x205   : > { %642 = vmatmul.bf16.gmra.mxu2 %v1564_v1 }
 0x206   : > { %1664 = vxpose.binary.xlu1.c.b16.end [2/4] (short) (narrow) %v792_v7, %v735_v6, 16  ;;  %v872_v10 = vunpack.c.l.b16 %v703_v4 }
 0x207   : > { %v578_v9 = vpop.f32.mrf.mxu0  ;;  %v623_v63 = vpop.f32.mrf.mxu1 }
 0x208   : > { %v686_v25 = vpack.c.bf16 %v578_v9, %v578_v9  ;;  %v704_v2 = vpack.c.bf16 %v623_v63, %v623_v63  ;;  %v871_v9 = vunpack.c.l.b16 %v702_v3 }
 0x20a   : > { %v843_v31 = vunpack.c.l.b16 %v686_v25  ;;  %v873_v6 = vunpack.c.l.b16 %v704_v2  ;;  %v633_v25 = vpop.f32.mrf.mxu2 }
 0x20b   : > { %662 = vmatmul.bf16.gmra.mxu3 %v1568_v8 }
 0x20f   : > { %v580_v11 = vpop.f32.mrf.mxu0  ;;  %v625_v5 = vpop.f32.mrf.mxu1 }
 0x210   : > { %v687_v23 = vpack.c.bf16 %v580_v11, %v580_v11  ;;  %v705_v7 = vpack.c.bf16 %v625_v5, %v625_v5 }
 0x212   : > { %v844_v28 = vunpack.c.l.b16 %v687_v23  ;;  %v874_v11 = vunpack.c.l.b16 %v705_v7  ;;  %v635_v30 = vpop.f32.mrf.mxu2 }
 0x214   : > { %v847_v36 = vpack.c.b16 %v844_v28, %v843_v31  ;;  %v876_v12 = vpack.c.b16 %v874_v11, %v873_v6  ;;  %v706_v28 = vpack.c.bf16 %v628_v18, %v628_v18 }
 0x215   : > { %647 = vmatmul.bf16.gmra.mxu2 %v1565_v14 }
 0x216   : > { %888 = vmatpush.bf16.msrb.mxu3 %v876_v12 }
 0x217   : > { %v583_v13 = vpop.f32.mrf.mxu0 }
 0x218   : > { %v688_v50 = vpack.c.bf16 %v583_v13, %v583_v13  ;;  %v875_v13 = vpack.c.b16 %v872_v10, %v871_v9 }
 0x21a   : > { %v845_v56 = vunpack.c.l.b16 %v688_v50  ;;  %889 = vmatpush.bf16.msrb.mxu3 %v875_v13 }
 0x21b   : > { %667 = vmatmul.bf16.gmra.mxu3 %v1569_v15 }
 0x21f   : > { %v585_v17 = vpop.f32.mrf.mxu0 }
 0x220   : > { %v689_v48 = vpack.c.bf16 %v585_v17, %v585_v17 }
 0x222   : > { %v846_v54 = vunpack.c.l.b16 %v689_v48 }
 0x224   : > { %v848_v59 = vpack.c.b16 %v846_v54, %v845_v56 }
 0x227   : > { %v588_v22 = vpop.f32.mrf.mxu0 }
 0x228   : > { %v690_v26 = vpack.c.bf16 %v588_v22, %v588_v22 }
 0x22a   : > { %v899_v32 = vunpack.c.l.b16 %v690_v26  ;;  %v1570_v26 = vld [vmem:[#allocation7 + $0xb8] sm:$0xff] }
 0x22b   : > { %672 = vmatmul.bf16.gmra.mxu3 %v1570_v26 }
 0x22f   : > { %v590_v27 = vpop.f32.mrf.mxu0 }
 0x230   : > { %v691_v29 = vpack.c.bf16 %v590_v27, %v590_v27  ;;  %v708_v27 = vpack.c.bf16 %v633_v25, %v633_v25 }
 0x232   : > { %v900_v33 = vunpack.c.l.b16 %v691_v29  ;;  %v707_v29 = vpack.c.bf16 %v630_v24, %v630_v24  ;;  %v929_v31 = vunpack.c.l.b16 %v708_v27 }
 0x234   : > { %v903_v37 = vpack.c.b16 %v900_v33, %v899_v32  ;;  %v709_v32 = vpack.c.bf16 %v635_v30, %v635_v30  ;;  %v927_v33 = vunpack.c.l.b16 %v706_v28  ;;  %v928_v34 = vunpack.c.l.b16 %v707_v29 }
 0x236   : > { %1667 = vxpose.binary.xlu2.c.b16.start [1/4] (short) (narrow) %v903_v37, %v847_v36, 16  ;;  %v930_v35 = vunpack.c.l.b16 %v709_v32  ;;  %v931_v37 = vpack.c.b16 %v928_v34, %v927_v33 }
 0x237   : > { %v593_v41 = vpop.f32.mrf.mxu0 }
 0x238   : > { %v692_v51 = vpack.c.bf16 %v593_v41, %v593_v41  ;;  %v932_v36 = vpack.c.b16 %v930_v35, %v929_v31 }
 0x23a   : > { %v901_v57 = vunpack.c.l.b16 %v692_v51 }
 0x23f   : > { %v595_v52 = vpop.f32.mrf.mxu0 }
 0x240   : > { %v693_v55 = vpack.c.bf16 %v595_v52, %v595_v52 }
 0x242   : > { %v902_v58 = vunpack.c.l.b16 %v693_v55 }
 0x244   : > { %v904_v60 = vpack.c.b16 %v902_v58, %v901_v57 }
 0x246   : > { %1668 = vxpose.binary.xlu2.c.b16.end [2/4] (short) (narrow) %v904_v60, %v848_v59, 16 }
 0x247   : > { %v598_v16 = vpop.f32.mrf.mxu0 }
 0x248   : > { %v694_v17 = vpack.c.bf16 %v598_v16, %v598_v16 }
 0x24a   : > { %v758_v20 = vunpack.c.l.b16 %v694_v17 }
 0x24f   : > { %v600_v19 = vpop.f32.mrf.mxu0 }
 0x250   : > { %v695_v21 = vpack.c.bf16 %v600_v19, %v600_v19 }
 0x252   : > { %v759_v22 = vunpack.c.l.b16 %v695_v21 }
 0x254   : > { %v762_v23 = vpack.c.b16 %v759_v22, %v758_v20 }
 0x256   : > { %777 = vmatpush.bf16.msrb.mxu1 %v762_v23 }
 0x25a   : > { %944 = vmatpush.bf16.msra.mxu1 %v932_v36 }
 0x25e   : > { %945 = vmatpush.bf16.msra.mxu1 %v931_v37 }
 0x26c   : > { %v653_v40 = vpop.f32.mrf.mxu3 }
 0x26d   : > { %v716_v41 = vpack.c.bf16 %v653_v40, %v653_v40 }
 0x26f   : > { %v1042_v43 = vunpack.c.l.b16 %v716_v41 }
 0x274   : > { %v655_v42 = vpop.f32.mrf.mxu3 }
 0x275   : > { %v717_v44 = vpack.c.bf16 %v655_v42, %v655_v42 }
 0x277   : > { %v1043_v45 = vunpack.c.l.b16 %v717_v44 }
 0x278   : > { %v638_v48 = vpop.f32.mrf.mxu2 }
 0x279   : > { %v1045_v46 = vpack.c.b16 %v1043_v45, %v1042_v43  ;;  %v710_v4 = vpack.c.bf16 %v638_v48, %v638_v48 }
 0x27b   : > { %v1053_v47 = vsel %vm955_vm5, %v1045_v46, 0  ;;  %v1008_v10 = vunpack.c.l.b16 %v710_v4 }
 0x27c   : > { %1061 = vmatpush.bf16.xpose.msra.mxu3 %v1053_v47 }
 0x27e   : > { %v658_v50 = vpop.f32.mrf.mxu3 }
 0x27f   : > { %v718_v5 = vpack.c.bf16 %v658_v50, %v658_v50 }
 0x280   : > { %v640_v51 = vpop.f32.mrf.mxu2 }
 0x281   : > { %v711_v6 = vpack.c.bf16 %v640_v51, %v640_v51  ;;  %v1072_v11 = vunpack.c.l.b16 %v718_v5 }
 0x283   : > { %v1009_v12 = vunpack.c.l.b16 %v711_v6 }
 0x285   : > { %v1012_v18 = vpack.c.b16 %v1009_v12, %v1008_v10 }
 0x286   : > { %v660_v53 = vpop.f32.mrf.mxu3 }
 0x287   : > { %v719_v7 = vpack.c.bf16 %v660_v53, %v660_v53  ;;  %v1018_v24 = vsel %vm955_vm5, %v1012_v18, 0 }
 0x288   : > { %v643_v54 = vpop.f32.mrf.mxu2 }
 0x289   : > { %v712_v58 = vpack.c.bf16 %v643_v54, %v643_v54  ;;  %v1073_v13 = vunpack.c.l.b16 %v719_v7 }
 0x28b   : > { %v1010_v63 = vunpack.c.l.b16 %v712_v58  ;;  %v1076_v19 = vpack.c.b16 %v1073_v13, %v1072_v11 }
 0x28d   : > { %v1082_v25 = vsel %vm955_vm5, %v1076_v19, 0 }
 0x28e   : > { %v663_v55 = vpop.f32.mrf.mxu3 }
 0x28f   : > { %v720_v59 = vpack.c.bf16 %v663_v55, %v663_v55 }
 0x290   : > { %v645_v56 = vpop.f32.mrf.mxu2 }
 0x291   : > { %v713_v60 = vpack.c.bf16 %v645_v56, %v645_v56  ;;  %v1074_v1 = vunpack.c.l.b16 %v720_v59 }
 0x293   : > { %v1011_v2 = vunpack.c.l.b16 %v713_v60 }
 0x295   : > { %v1013_v8 = vpack.c.b16 %v1011_v2, %v1010_v63 }
 0x296   : > { %v665_v57 = vpop.f32.mrf.mxu3 }
 0x297   : > { %v721_v61 = vpack.c.bf16 %v665_v57, %v665_v57  ;;  %v1021_v15 = vsel %vm955_vm5, %v1013_v8, 0 }
 0x298   : > { %v648_v62 = vpop.f32.mrf.mxu2  ;;  %1029 = vmatpush.bf16.xpose.msra.mxu2 %v1021_v15 }
 0x299   : > { %v1075_v3 = vunpack.c.l.b16 %v721_v61  ;;  %v714_v20 = vpack.c.bf16 %v648_v62, %v648_v62 }
 0x29b   : > { %v1077_v9 = vpack.c.b16 %v1075_v3, %v1074_v1  ;;  %v1040_v22 = vunpack.c.l.b16 %v714_v20 }
 0x29d   : > { %v1085_v16 = vsel %vm955_vm5, %v1077_v9, 0 }
 0x29e   : > { %v668_v14 = vpop.f32.mrf.mxu3 }
 0x29f   : > { %v722_v32 = vpack.c.bf16 %v668_v14, %v668_v14 }
 0x2a0   : > { %v650_v17 = vpop.f32.mrf.mxu2  ;;  %1030 = vmatpush.bf16.xpose.msra.mxu2 %v1018_v24  ;;  %v1572_v24 = vld [vmem:[#allocation8 + $0x8] sm:$0xff] }
 0x2a1   : > { %v715_v21 = vpack.c.bf16 %v650_v17, %v650_v17 }
 0x2a2   : > { %v1665_v38 = vpop.trf.xlu1 }
 0x2a3   : > { %1499 = vmatmul.msk.bf16.vlgmr.msrb.gmra.mxu1 %vm766_vm4, %v1665_v38  ;;  %v1041_v23 = vunpack.c.l.b16 %v715_v21 }
 0x2a4   : > { %1093 = vmatpush.bf16.xpose.msrb.mxu1 %v1085_v16 }
 0x2a5   : > { %v1044_v27 = vpack.c.b16 %v1041_v23, %v1040_v22 }
 0x2a6   : > { %v670_v26 = vpop.f32.mrf.mxu3 }
 0x2a7   : > { %v1050_v28 = vsel %vm955_vm5, %v1044_v27, 0  ;;  %v723_v33 = vpack.c.bf16 %v670_v26, %v670_v26 }
 0x2a8   : > { %1062 = vmatpush.bf16.xpose.msra.mxu3 %v1050_v28 }
 0x2a9   : > { %v1105_v40 = vunpack.c.l.b16 %v723_v33  ;;  %v1571_v33 = vld [vmem:[#allocation8] sm:$0xff] }
 0x2aa   : > { %v1666_v39 = vpop.trf.xlu1 }
 0x2ab   : > { %1500 = vmatmul.msk.bf16.vlgmr.msrb.gmra.mxu2 %vm766_vm4, %v1666_v39  ;;  %v1104_v39 = vunpack.c.l.b16 %v722_v32 }
 0x2ac   : > { %1094 = vmatpush.bf16.xpose.msrb.mxu1 %v1082_v25 }
 0x2ad   : > { %v1108_v44 = vpack.c.b16 %v1105_v40, %v1104_v39  ;;  %v1577_v39 = vld [vmem:[#allocation8 + $0x30] sm:$0xff] }
 0x2ae   : > { %v673_v29 = vpop.f32.mrf.mxu3 }
 0x2af   : > { %v724_v30 = vpack.c.bf16 %v673_v29, %v673_v29  ;;  %v1114_v46 = vsel %vm955_vm5, %v1108_v44, 0 }
 0x2b1   : > { %v1106_v34 = vunpack.c.l.b16 %v724_v30 }
 0x2b6   : > { %v675_v31 = vpop.f32.mrf.mxu3 }
 0x2b7   : > { %v725_v35 = vpack.c.bf16 %v675_v31, %v675_v31 }
 0x2b9   : > { %v1107_v36 = vunpack.c.l.b16 %v725_v35  ;;  %v1573_v35 = vld [vmem:[#allocation8 + $0x10] sm:$0xff] }
 0x2bb   : > { %v1109_v41 = vpack.c.b16 %v1107_v36, %v1106_v34  ;;  %v1574_v34 = vld [vmem:[#allocation8 + $0x18] sm:$0xff]  ;;  %v1576_v36 = vld [vmem:[#allocation8 + $0x28] sm:$0xff] }
 0x2bd   : > { %v1117_v43 = vsel %vm955_vm5, %v1109_v41, 0 }
 0x2be   : > { %1125 = vmatpush.bf16.xpose.msrb.mxu2 %v1117_v43 }
 0x2c6   : > { %1126 = vmatpush.bf16.xpose.msrb.mxu2 %v1114_v46 }
 0x2d7   : > { %v1669_v49 = vpop.trf.xlu2 }
 0x2d8   : > { %1501 = vmatmul.msk.bf16.vlgmr.msrb.gmra.mxu3 %vm766_vm4, %v1669_v49 }
 0x2d9   : > { %1173 = vmatpush.bf16.msrb.mxu3 %v1572_v24 }
 0x2dd   : > { %1174 = vmatpush.bf16.msrb.mxu3 %v1571_v33 }
 0x2df   : > { %v1670_v52 = vpop.trf.xlu2 }
 0x2e0   : > { %1502 = vmatmul.msk.bf16.vlgmr.msra.gmra.mxu1 %vm766_vm4, %v1670_v52 }
 0x2e1   : > { %1201 = vmatpush.bf16.msra.mxu1 %v1574_v34 }
 0x2e5   : > { %1202 = vmatpush.bf16.msra.mxu1 %v1573_v35 }
 0x320   : > { %v779_v37 = vpop.f32.mrf.mxu1 }
 0x321   : > { %v951_v38 = vmul.f32 0.17677669, %v779_v37  ;;  %v1578_v37 = vld [vmem:[#allocation8 + $0x38] sm:$0xff] }
 0x323   : > { %v956_v42 = vsel %vm955_vm5, %v951_v38, -inf }
 0x324   : > { %957 = vmax.xlane.f32.xlu0 %v956_v42 }
 0x328   : > { %v781_v45 = vpop.f32.mrf.mxu1 }
 0x32e   : > { %v835_v47 = vpop.f32.mrf.mxu2 }
 0x32f   : > { %v952_v48 = vmul.f32 0.17677669, %v835_v47 }
 0x331   : > { %v959_v49 = vsel %vm955_vm5, %v952_v48, -inf }
 0x332   : > { %960 = vmax.xlane.f32.xlu1 %v959_v49 }
 0x336   : > { %v837_v50 = vpop.f32.mrf.mxu2 }
 0x35b   : > { %v891_v51 = vpop.f32.mrf.mxu3 }
 0x35c   : > { %v953_v52 = vmul.f32 0.17677669, %v891_v51 }
 0x35d   : > { %v947_v53 = vpop.f32.mrf.mxu1 }
 0x35e   : > { %v954_v54 = vmul.f32 0.17677669, %v947_v53  ;;  %v962_v55 = vsel %vm955_vm5, %v953_v52, -inf }
 0x35f   : > { %963 = vmax.xlane.f32.xlu2 %v962_v55 }
 0x360   : > { %v965_v56 = vsel %vm955_vm5, %v954_v54, -inf }
 0x361   : > { %966 = vmax.xlane.f32.xlu0 %v965_v56 }
 0x363   : > { %v893_v57 = vpop.f32.mrf.mxu3 }
 0x365   : > { %v949_v58 = vpop.f32.mrf.mxu1 }
 0x397   : > { %v958_v59 = vpop.xlane.xlu0 %957 }
 0x398   : > { %v968_v60 = vsub.f32 %v951_v38, %v958_v59  ;;  %v1575_v38 = vld [vmem:[#allocation8 + $0x20] sm:$0xff] }
 0x39a   : > { %v972_v61 = vmul.f32 1.442695, %v968_v60  ;;  %v1673_v60 = vld [vmem:[%s2137_s5] ss:$0 sm:$0xff] }
 0x39c   : > { %1678 = vpow2.f32 %v972_v61 }
 0x3a2   : > { %v1679_v62 = vpop.eup %1678 }
 0x3a3   : > { %v980_v63 = vsel %vm955_vm5, %v1679_v62, 0.0 }
 0x3a4   : > { %981 = vadd.xlane.f32.xlu0 %v980_v63 }
 0x3a5   : > { %v961_v1 = vpop.xlane.xlu1 %960 }
 0x3a6   : > { %v969_v2 = vsub.f32 %v952_v48, %v961_v1 }
 0x3a8   : > { %v974_v3 = vmul.f32 1.442695, %v969_v2 }
 0x3aa   : > { %1680 = vpow2.f32 %v974_v3 }
 0x3b0   : > { %v1681_v4 = vpop.eup %1680 }
 0x3b1   : > { %v983_v5 = vsel %vm955_vm5, %v1681_v4, 0.0 }
 0x3b2   : > { %984 = vadd.xlane.f32.xlu0 %v983_v5 }
 0x3d2   : > { %v964_v6 = vpop.xlane.xlu2 %963 }
 0x3d3   : > { %v970_v9 = vsub.f32 %v953_v52, %v964_v6 }
 0x3d4   : > { %v967_v7 = vpop.xlane.xlu0 %966 }
 0x3d5   : > { %v971_v8 = vsub.f32 %v954_v54, %v967_v7  ;;  %v976_v11 = vmul.f32 1.442695, %v970_v9 }
 0x3d7   : > { %v978_v10 = vmul.f32 1.442695, %v971_v8 }
 0x3d9   : > { %1682 = vpow2.f32 %v978_v10 }
 0x3da   : > { %1684 = vpow2.f32 %v976_v11 }
 0x3df   : > { %v1683_v12 = vpop.eup %1682 }
 0x3e0   : > { %v989_v13 = vsel %vm955_vm5, %v1683_v12, 0.0  ;;  %v1685_v14 = vpop.eup %1684 }
 0x3e1   : > { %990 = vadd.xlane.f32.xlu0 %v989_v13  ;;  %v986_v15 = vsel %vm955_vm5, %v1685_v14, 0.0 }
 0x3e9   : > { %987 = vadd.xlane.f32.xlu0 %v986_v15 }
 0x417   : > { %v982_v16 = vpop.xlane.xlu0 %981 }
 0x418   : > { %1686 = vrcp.f32 %v982_v16 }
 0x41e   : > { %v1687_v17 = vpop.eup %1686 }
 0x41f   : > { %v996_v18 = vmul.f32 %v1687_v17, %v1679_v62 }
 0x421   : > { %v1000_v19 = vpack.c.bf16 %v996_v18, %v996_v18 }
 0x423   : > { %1503 = vmatmul.msk.bf16.vlgmr.msra.gmra.mxu2 %vm955_vm5, %v1000_v19 }
 0x424   : > { %1229 = vmatpush.bf16.msra.mxu2 %v1576_v36 }
 0x425   : > { %v985_v20 = vpop.xlane.xlu0 %984 }
 0x426   : > { %1688 = vrcp.f32 %v985_v20 }
 0x428   : > { %1230 = vmatpush.bf16.msra.mxu2 %v1575_v38 }
 0x42c   : > { %v1689_v21 = vpop.eup %1688 }
 0x42d   : > { %v997_v22 = vmul.f32 %v1689_v21, %v1681_v4 }
 0x42f   : > { %v1001_v23 = vpack.c.bf16 %v997_v22, %v997_v22 }
 0x431   : > { %1504 = vmatmul.msk.bf16.vlgmr.msra.gmra.mxu3 %vm955_vm5, %v1001_v23 }
 0x432   : > { %1257 = vmatpush.bf16.msra.mxu3 %v1578_v37 }
 0x436   : > { %1258 = vmatpush.bf16.msra.mxu3 %v1577_v39 }
 0x454   : > { %v991_v25 = vpop.xlane.xlu0 %990 }
 0x455   : > { %1690 = vrcp.f32 %v991_v25 }
 0x45b   : > { %v1691_v26 = vpop.eup %1690 }
 0x45c   : > { %v999_v27 = vmul.f32 %v1691_v26, %v1683_v12  ;;  %v988_v28 = vpop.xlane.xlu0 %987 }
 0x45d   : > { %1692 = vrcp.f32 %v988_v28 }
 0x45e   : > { %v1003_v29 = vpack.c.bf16 %v999_v27, %v999_v27 }
 0x460   : > { %1506 = vmatmul.msk.bf16.vlgmr.msrb.gmra.mxu2 %vm955_vm5, %v1003_v29 }
 0x463   : > { %v1693_v30 = vpop.eup %1692 }
 0x464   : > { %v998_v31 = vmul.f32 %v1693_v30, %v1685_v14 }
 0x466   : > { %v1002_v32 = vpack.c.bf16 %v998_v31, %v998_v31 }
 0x468   : > { %1505 = vmatmul.msk.bf16.vlgmr.msrb.gmra.mxu1 %vm955_vm5, %v1002_v32 }
 0x4a6   : > { %v1032_v40 = vpop.f32.mrf.mxu2 }
 0x4a7   : > { %v1132_v41 = vpack.c.bf16 %v1032_v40, %v1032_v40 }
 0x4a9   : > { %1515 = vmatmul.msk.bf16.vlgmr.msrb.gmra.mxu3 %vm766_vm4, %v1132_v41 }
 0x4ae   : > { %v1034_v42 = vpop.f32.mrf.mxu2 }
 0x4b4   : > { %v1064_v43 = vpop.f32.mrf.mxu3 }
 0x4b5   : > { %v1133_v44 = vpack.c.bf16 %v1064_v43, %v1064_v43 }
 0x4b7   : > { %1524 = vmatmul.msk.bf16.vlgmr.msra.gmra.mxu1 %vm766_vm4, %v1133_v44 }
 0x4bc   : > { %v1066_v45 = vpop.f32.mrf.mxu3 }
 0x4e3   : > { %v1128_v46 = vpop.f32.mrf.mxu2 }
 0x4e4   : > { %v1135_v47 = vpack.c.bf16 %v1128_v46, %v1128_v46 }
 0x4e5   : > { %v1096_v48 = vpop.f32.mrf.mxu1 }
 0x4e6   : > { %v1134_v49 = vpack.c.bf16 %v1096_v48, %v1096_v48  ;;  %1542 = vmatmul.msk.bf16.vlgmr.msra.gmra.mxu3 %vm766_vm4, %v1135_v47 }
 0x4e8   : > { %1533 = vmatmul.msk.bf16.vlgmr.msra.gmra.mxu2 %vm766_vm4, %v1134_v49 }
 0x4eb   : > { %v1130_v50 = vpop.f32.mrf.mxu2 }
 0x4ed   : > { %v1098_v51 = vpop.f32.mrf.mxu1 }
 0x52c   : > { %v1176_v52 = vpop.f32.mrf.mxu3 }
 0x534   : > { %v1178_v53 = vpop.f32.mrf.mxu3  ;;  %v1204_v54 = vpop.f32.mrf.mxu1 }
 0x535   : > { %v1264_v57 = vadd.f32 %v1204_v54, %v1176_v52 }
 0x53c   : > { %v1206_v55 = vpop.f32.mrf.mxu1 }
 0x569   : > { %v1260_v56 = vpop.f32.mrf.mxu3 }
 0x56b   : > { %v1232_v58 = vpop.f32.mrf.mxu2 }
 0x56c   : > { %v1265_v59 = vadd.f32 %v1264_v57, %v1232_v58 }
 0x56e   : > { %v1266_v61 = vadd.f32 %v1265_v59, %v1260_v56 }
 0x570   : > { %v1271_v62 = vadd.f32 %v1673_v60, %v1266_v61 }
 0x571   : > { %v1262_v63 = vpop.f32.mrf.mxu3 }
 0x572   : > { %v1272_v1 = vadd.f32 %v1271_v62, %v2058_v0 }
 0x573   : > { %v1234_v2 = vpop.f32.mrf.mxu2 }
 0x574   : > { %1273 = vst [vmem:[%s316_s14] sm:$0xff] %v1272_v1 }
 0x575   : > { %1841 = shalt.err (!%p1838_p11)
}
 0x576   : > { %1596 = dma.vmem_to_hbm [thread:$0]  (%p2013_p3), %s1288_s17, 128, %s1290_s18, %s1275_s25  }
 0x577 PF: > { %s1301_s13 = sand.u32 1, %s1876_s21   ;;  %p2145_p12 = scmp.ge.s32.totalorder %s1888_s24, 2 }
 0x578   : > { %s1302_s29 = scalar_lea.sflag [#allocation4], %s1301_s13 }
 0x579   : > { %p1613_p13 = pnand %p2145_p12, %p1966_p6 }
 0x57b   : > { %p1614_p0 = pneg %p1613_p13 }
 0x57d   : > { %1871 = dma.done.wait (%p1614_p0), %s1302_s29, 128  }
 0x57e   : > { %1873 = vsyncadd (%p1614_p0), %s1302_s29, 4294967168  ;;  %p21_p5 = scmp.ge.s32.totalorder %s2000_s7, 4   ;;  %s2146_s21 = smov %s1880_s22 }
 0x57f   : > { %s2147_s22 = smov %s1884_s23  ;;  %s2148_s23 = smov %s2009_s11 }
 0x580   : > { %s2149_s24 = smov %s2000_s7  ;;  %23 = sbr.rel (!%p21_p5) target bundleno = 7 (0x7), region = 101 }
 0x585   :  { %1308 = vsyncpa [#allocation3], 1 }
 0x586   :  { %1310 = vsyncpa [#allocation3 + $0x1], 1 }
 0x587   :  { %1311 = vsyncpa [#allocation6], 1 }
 0x588   :  { %1312 = vsyncpa [#allocation9], 1 }
 0x589   :  { %1313 = vsyncpa [#allocation4], 1 }
 0x58a   :  { %1315 = vsyncpa [#allocation4 + $0x1], 1 }

</bundles_post_ra>
